<compile_context>
chip_gen: v7x
topology: tpu7x:2x2x1
jax: 0.10.0
libtpu: 0.0.40
codegen_flags: <defaults>
</compile_context>

<pallas_src>
import functools

import numpy as np
import jax
import jax.numpy as jnp
from jax import lax
from jax.experimental import pallas as pl
from jax.experimental.pallas import tpu as pltpu


KSIZE = 7                  # Gaussian kernel is (7, 7, 7), as in the module
PAD = (KSIZE - 1) // 2     # depth padding = 3


def gaussian_kernel_np(shape=(KSIZE, KSIZE, KSIZE), sigma=1.0, normfactor=1.0):
    """Numpy replica of GaussianKernel() (deterministic, no checkpoint)."""
    m, n, p = [(ss - 1.0) / 2.0 for ss in shape]
    y, x, z = np.ogrid[-m:m + 1, -n:n + 1, -p:p + 1]
    h = np.exp(-(x * x + y * y + z * z) / (2.0 * sigma ** 2))
    h[h < np.finfo(h.dtype).eps * h.max()] = 0
    maxh = h.max()
    if maxh != 0:
        h /= maxh
        h = h * normfactor
    return h.astype(np.float32)


def _toeplitz_valid(length, taps):
    """Banded (length, length-6) matrix T with T[a, b] = taps[a - b], so that
    X @ T == 'valid' cross-correlation of X's last axis with `taps`."""
    k = len(taps)
    out = length - (k - 1)
    t = np.zeros((length, out), np.float32)
    for b in range(out):
        t[b:b + k, b] = taps
    return t


def _kde_kernel(pred_ref, target_ref, tw_ref, out_ref, z_ref, dpad_ref,
                *, g1, factor, nb, D, H, W):
    """One batch block of `nb` volumes -> 3 partial sums in its own out block."""
    Ho, Wo = H - (KSIZE - 1), W - (KSIZE - 1)
    Dp = D + 2 * PAD

    p = pred_ref[...]        # (nb, D, H, W) f32
    t = target_ref[...]

    # Fused elementwise prologue: one pass over p and t.
    # conv3d is linear, so Din - Dtar = conv3d(pred - factor*target, K):
    # only ONE (separable) convolution per element is needed.
    diff = p - factor * t                      # (nb, D, H, W)
    pt_sum = jnp.sum(p * t)                    # dice: sum(pred * target)
    tt_sum = jnp.sum(t * t)                    # dice: sum(target * target)

    # --- separable pass 1 (along W) on the MXU ----------------------------
    # (nb, D, H, W) -> (nb*D*H, W) is layout-free (H % 8 == 0); the batch
    # block is folded into the matmul M dimension.
    # NOTE: for production W, cast inputs to bf16 (keep f32 accumulate) and
    # tile W into 128-wide halo'd strips with a banded tw (see TODO above).
    z2d = jnp.dot(diff.reshape(nb * D * H, W), tw_ref[...],
                  preferred_element_type=jnp.float32)          # (nb*D*H, Wo)
    z_ref[...] = z2d.reshape(nb, D, H, Wo)

    # --- separable pass 2 (along H): 7 sublane-shifted windows read from the
    # VMEM scratch, so the shifted windows are addressed loads (ld slot) that
    # overlap with the VALU FMAs.
    yh = g1[0] * z_ref[:, :, 0:Ho, :]
    for kh in range(1, KSIZE):
        yh = yh + g1[kh] * z_ref[:, :, kh:kh + Ho, :]          # (nb, D, Ho, Wo)

    # --- separable pass 3 (along depth): 'same' zero padding done on the
    # small post-H intermediate (no HBM padding of the inputs).
    zero_planes = jnp.zeros((nb, PAD, Ho, Wo), jnp.float32)
    dpad_ref[:, 0:PAD, :, :] = zero_planes
    dpad_ref[:, PAD + D:Dp, :, :] = zero_planes
    dpad_ref[:, PAD:PAD + D, :, :] = yh
    c = g1[0] * dpad_ref[:, 0:D, :, :]
    for kd in range(1, KSIZE):
        c = c + g1[kd] * dpad_ref[:, kd:kd + D, :, :]          # (nb, D, Ho, Wo)

    sq_sum = jnp.sum(c * c)                    # partial for MSE(Din, Dtar)

    # Three lane-dense 128-wide splat rows into this step's own output block
    # (distinct block per grid step -> safe under "parallel" semantics).
    out_ref[:, 0:1, :] = jnp.broadcast_to(sq_sum, (1, 1, 128))
    out_ref[:, 1:2, :] = jnp.broadcast_to(pt_sum, (1, 1, 128))
    out_ref[:, 2:3, :] = jnp.broadcast_to(tt_sum, (1, 1, 128))


def _pick_batch_block(n):
    """Largest divisor of n that still leaves >= 2 grid blocks: feeds both v7x
    TensorCores while amortizing the ~0.35us/step overhead for larger N."""
    if n <= 1:
        return 1
    divs = [d for d in range(1, n) if n % d == 0 and n // d >= 2]
    return max(divs) if divs else 1


def kde_loss3d(pred, target, factor, batch_block=None):
    """Pallas implementation of KDE_loss3D(factor).forward(pred, target).

    pred/target: (N, D, H, W) float32 (NCDHW with the singleton C squeezed —
    the PyTorch module unsqueezes C=1 itself)."""
    N, D, H, W = pred.shape
    Ho, Wo = H - (KSIZE - 1), W - (KSIZE - 1)
    Dp = D + 2 * PAD

    kern3d = gaussian_kernel_np()
    # Exact separable 1-D factor: the kernel is max-normalized (normfactor=1),
    # so its centre row equals the 1-D profile g and K = g (x) g (x) g.
    g1 = kern3d[PAD, PAD, :].astype(np.float32)
    assert np.allclose(np.einsum('i,j,k->ijk', g1, g1, g1), kern3d,
                       rtol=1e-5, atol=1e-7), (
        "Gaussian kernel is not rank-1 separable with the centre-row factor "
        "(non-default sigma/normfactor needs a proper rank-1 decomposition).")
    tw = jnp.asarray(_toeplitz_valid(W, g1))                   # (W, Wo) f32

    nb = _pick_batch_block(N) if batch_block is None else int(batch_block)
    assert N % nb == 0, "batch_block must divide N"
    grid_n = N // nb

    # VMEM budget derived from the actual block sizes (double-buffered inputs,
    # the two scratches, and headroom for live intermediates), capped per
    # generation via get_tpu_info (v7x has only 64 MiB per TensorCore).
    in_block = nb * D * H * W * 4
    est = (2 * 2 * in_block                    # 2 inputs x 2 pipeline buffers
           + 2 * W * Wo * 4                    # tw (constant index; still 2-buffered)
           + 2 * 3 * 128 * 4                   # output block
           + nb * D * H * Wo * 4               # z scratch (post-W)
           + nb * Dp * Ho * Wo * 4             # depth-padded post-H scratch
           + 4 * in_block)                     # diff / yh / c live values
    try:
        vmem_cap = int(pltpu.get_tpu_info().vmem_capacity_bytes)
    except Exception:
        vmem_cap = 64 * 1024 * 1024            # smallest per-core VMEM (v7x)
    vmem_limit = int(min(max(2 * est, 16 * 1024 * 1024), (3 * vmem_cap) // 4))

    kernel_fn = functools.partial(
        _kde_kernel, g1=tuple(float(v) for v in g1),
        factor=float(factor), nb=nb, D=D, H=H, W=W)

    partials = pl.pallas_call(
        kernel_fn,
        out_shape=jax.ShapeDtypeStruct((grid_n, 3, 128), jnp.float32),
        grid_spec=pltpu.PrefetchScalarGridSpec(
            num_scalar_prefetch=0,
            grid=(grid_n,),
            in_specs=[
                pl.BlockSpec((nb, D, H, W), lambda n: (n, 0, 0, 0)),
                pl.BlockSpec((nb, D, H, W), lambda n: (n, 0, 0, 0)),
                pl.BlockSpec((W, Wo), lambda n: (0, 0)),
            ],
            out_specs=pl.BlockSpec((1, 3, 128), lambda n: (n, 0, 0)),
            scratch_shapes=[
                pltpu.VMEM((nb, D, H, Wo), jnp.float32),      # z (post-W pass)
                pltpu.VMEM((nb, Dp, Ho, Wo), jnp.float32),    # depth-padded post-H
            ]),
        compiler_params=pltpu.CompilerParams(
            # Each batch block writes its own output block, so the axis is
            # safely "parallel" (both v7x TensorCores get work; no-op on
            # single-core v5e/v6e).
            dimension_semantics=("parallel",),
            vmem_limit_bytes=vmem_limit),
    )(pred, target, tw)

    sq_total = jnp.sum(partials[:, 0, 0])
    pt_total = jnp.sum(partials[:, 1, 0])
    tt_total = jnp.sum(partials[:, 2, 0])

    # kde_loss = MSELoss()(Din, Dtar): mean over N*1*D*Ho*Wo conv outputs.
    kde_loss = sq_total / float(N * 1 * D * Ho * Wo)

    # dice_loss(pred / factor, target)
    smooth = 1.0
    intersection = pt_total / factor          # sum((pred/factor) * target)
    a_sum = intersection                      # same product, same sum
    b_sum = tt_total                          # sum(target * target)
    dice = 1.0 - (2.0 * intersection + smooth) / (a_sum + b_sum + smooth)

    return kde_loss + dice


def reference_loss(pred, target, factor):
    """Pure-JAX reference (mirrors the PyTorch forward) for verification."""
    kern = jnp.asarray(gaussian_kernel_np())[None, None]      # (1,1,7,7,7)
    p = pred[:, None]                                         # (N,1,D,H,W)
    t = target[:, None]
    dn = ("NCDHW", "OIDHW", "NCDHW")
    pad3 = ((3, 3), (0, 0), (0, 0))
    din = lax.conv_general_dilated(p, kern, (1, 1, 1), pad3,
                                   dimension_numbers=dn,
                                   precision=lax.Precision.HIGHEST)
    dtar = lax.conv_general_dilated(t, factor * kern, (1, 1, 1), pad3,
                                    dimension_numbers=dn,
                                    precision=lax.Precision.HIGHEST)
    kde = jnp.mean((din - dtar) ** 2)
    iflat = (p / factor).reshape(-1)
    tflat = t.reshape(-1)
    inter = jnp.sum(iflat * tflat)
    a_sum = jnp.sum(tflat * iflat)
    b_sum = jnp.sum(tflat * tflat)
    dice = 1.0 - (2.0 * inter + 1.0) / (a_sum + b_sum + 1.0)
    return kde + dice


if __name__ == "__main__":
    factor = 800.0  # typical DeepSTORM3D setting; constructor arg of the module

    key = jax.random.PRNGKey(0)
    k1, k2 = jax.random.split(key)
    # (N, D, H, W) = (2, 8, 16, 16); conv output spatial = (8, 10, 10)
    pred = jax.random.uniform(k1, (2, 8, 16, 16), dtype=jnp.float32)
    target = (jax.random.uniform(k2, (2, 8, 16, 16)) < 0.05).astype(jnp.float32)

    loss = jax.block_until_ready(kde_loss3d(pred, target, factor))
    ref = jax.block_until_ready(reference_loss(pred, target, factor))
    np.testing.assert_allclose(np.asarray(loss), np.asarray(ref),
                               rtol=2e-3, atol=1e-3)

    print("KERNEL_OK")
</pallas_src>

<mosaic_0001>
module attributes {stable_mosaic.version = 11 : i64} {
  func.func @_kde_kernel(%arg0: i32, %arg1: memref<1x8x16x16xf32, #tpu.memory_space<vmem>>, %arg2: memref<1x8x16x16xf32, #tpu.memory_space<vmem>>, %arg3: memref<16x10xf32, #tpu.memory_space<vmem>>, %arg4: memref<1x3x128xf32, #tpu.memory_space<vmem>>, %arg5: memref<1x8x16x10xf32, #tpu.memory_space<vmem>>, %arg6: memref<1x14x10x10xf32, #tpu.memory_space<vmem>>) attributes {dimension_semantics = [#tpu.dimension_semantics<parallel>], iteration_bounds = array<i64: 2>, scalar_prefetch = 0 : i64, scratch_operands = 2 : i64, tpu.core_type = #tpu.core_type<tc>, window_params = [{transform_indices = @transform_0, window_bounds = array<i64: 1, 8, 16, 16>}, {transform_indices = @transform_1, window_bounds = array<i64: 1, 8, 16, 16>}, {pipeline_mode = #tpu.pipeline_mode<synchronous>, transform_indices = @transform_2, window_bounds = array<i64: 16, 10>}, {transform_indices = @transform_3, window_bounds = array<i64: 1, 3, 128>}]} {
    %c0 = arith.constant 0 : index
    %c0_0 = arith.constant 0 : index
    %c0_1 = arith.constant 0 : index
    %c0_2 = arith.constant 0 : index
    %0 = vector.load %arg1[%c0, %c0_0, %c0_1, %c0_2] : memref<1x8x16x16xf32, #tpu.memory_space<vmem>>, vector<1x8x16x16xf32>
    %c0_3 = arith.constant 0 : index
    %c0_4 = arith.constant 0 : index
    %c0_5 = arith.constant 0 : index
    %c0_6 = arith.constant 0 : index
    %1 = vector.load %arg2[%c0_3, %c0_4, %c0_5, %c0_6] : memref<1x8x16x16xf32, #tpu.memory_space<vmem>>, vector<1x8x16x16xf32>
    %cst = arith.constant 8.000000e+02 : f32
    %2 = vector.broadcast %cst : f32 to vector<1x8x16x16xf32>
    %3 = arith.mulf %2, %1 : vector<1x8x16x16xf32>
    %4 = arith.subf %0, %3 : vector<1x8x16x16xf32>
    %5 = arith.mulf %0, %1 : vector<1x8x16x16xf32>
    %6 = vector.shape_cast %5 : vector<1x8x16x16xf32> to vector<1x1x8x16x16xf32>
    %cst_7 = arith.constant dense<0.000000e+00> : vector<1xf32>
    %7 = vector.multi_reduction <add>, %6, %cst_7 [1, 2, 3, 4] : vector<1x1x8x16x16xf32> to vector<1xf32>
    %8 = vector.shape_cast %7 : vector<1xf32> to vector<1x1x1x1x1xf32>
    %9 = vector.extract %8[0, 0, 0, 0, 0] : f32 from vector<1x1x1x1x1xf32>
    %10 = arith.mulf %1, %1 : vector<1x8x16x16xf32>
    %11 = vector.shape_cast %10 : vector<1x8x16x16xf32> to vector<1x1x8x16x16xf32>
    %cst_8 = arith.constant dense<0.000000e+00> : vector<1xf32>
    %12 = vector.multi_reduction <add>, %11, %cst_8 [1, 2, 3, 4] : vector<1x1x8x16x16xf32> to vector<1xf32>
    %13 = vector.shape_cast %12 : vector<1xf32> to vector<1x1x1x1x1xf32>
    %14 = vector.extract %13[0, 0, 0, 0, 0] : f32 from vector<1x1x1x1x1xf32>
    %15 = vector.shape_cast %4 : vector<1x8x16x16xf32> to vector<128x16xf32>
    %c0_9 = arith.constant 0 : index
    %c0_10 = arith.constant 0 : index
    %16 = vector.load %arg3[%c0_9, %c0_10] : memref<16x10xf32, #tpu.memory_space<vmem>>, vector<16x10xf32>
    %cst_11 = arith.constant dense<0.000000e+00> : vector<128x10xf32>
    %17 = tpu.matmul %15, %16, %cst_11 {dimension_numbers = #tpu.dot_dimension_numbers<[1], [0], [0], [1], [0, 0, 1, 1], [], []>} : vector<128x16xf32>, vector<16x10xf32>, vector<128x10xf32> -> vector<128x10xf32>
    %18 = vector.shape_cast %17 : vector<128x10xf32> to vector<1x8x16x10xf32>
    %c0_12 = arith.constant 0 : index
    %c0_13 = arith.constant 0 : index
    %c0_14 = arith.constant 0 : index
    %c0_15 = arith.constant 0 : index
    %19 = vector.load %arg5[%c0_12, %c0_13, %c0_14, %c0_15] : memref<1x8x16x10xf32, #tpu.memory_space<vmem>>, vector<1x8x16x10xf32>
    tpu.vector_store %arg5[%c0_12, %c0_13, %c0_14, %c0_15], %18 {strides = array<i32>} : memref<1x8x16x10xf32, #tpu.memory_space<vmem>>, vector<1x8x16x10xf32>,
    %c0_16 = arith.constant 0 : index
    %c0_17 = arith.constant 0 : index
    %c0_18 = arith.constant 0 : index
    %c0_19 = arith.constant 0 : index
    %20 = vector.load %arg5[%c0_16, %c0_17, %c0_18, %c0_19] : memref<1x8x16x10xf32, #tpu.memory_space<vmem>>, vector<1x8x10x10xf32>
    %cst_20 = arith.constant 0.0111089963 : f32
    %21 = vector.broadcast %cst_20 : f32 to vector<1x8x10x10xf32>
    %22 = arith.mulf %21, %20 : vector<1x8x10x10xf32>
    %c0_21 = arith.constant 0 : index
    %c0_22 = arith.constant 0 : index
    %c1 = arith.constant 1 : index
    %c0_23 = arith.constant 0 : index
    %23 = vector.load %arg5[%c0_21, %c0_22, %c1, %c0_23] : memref<1x8x16x10xf32, #tpu.memory_space<vmem>>, vector<1x8x10x10xf32>
    %cst_24 = arith.constant 0.135335281 : f32
    %24 = vector.broadcast %cst_24 : f32 to vector<1x8x10x10xf32>
    %25 = arith.mulf %24, %23 : vector<1x8x10x10xf32>
    %26 = arith.addf %22, %25 : vector<1x8x10x10xf32>
    %c0_25 = arith.constant 0 : index
    %c0_26 = arith.constant 0 : index
    %c2 = arith.constant 2 : index
    %c0_27 = arith.constant 0 : index
    %27 = vector.load %arg5[%c0_25, %c0_26, %c2, %c0_27] : memref<1x8x16x10xf32, #tpu.memory_space<vmem>>, vector<1x8x10x10xf32>
    %cst_28 = arith.constant 0.606530666 : f32
    %28 = vector.broadcast %cst_28 : f32 to vector<1x8x10x10xf32>
    %29 = arith.mulf %28, %27 : vector<1x8x10x10xf32>
    %30 = arith.addf %26, %29 : vector<1x8x10x10xf32>
    %c0_29 = arith.constant 0 : index
    %c0_30 = arith.constant 0 : index
    %c3 = arith.constant 3 : index
    %c0_31 = arith.constant 0 : index
    %31 = vector.load %arg5[%c0_29, %c0_30, %c3, %c0_31] : memref<1x8x16x10xf32, #tpu.memory_space<vmem>>, vector<1x8x10x10xf32>
    %cst_32 = arith.constant 1.000000e+00 : f32
    %32 = vector.broadcast %cst_32 : f32 to vector<1x8x10x10xf32>
    %33 = arith.mulf %32, %31 : vector<1x8x10x10xf32>
    %34 = arith.addf %30, %33 : vector<1x8x10x10xf32>
    %c0_33 = arith.constant 0 : index
    %c0_34 = arith.constant 0 : index
    %c4 = arith.constant 4 : index
    %c0_35 = arith.constant 0 : index
    %35 = vector.load %arg5[%c0_33, %c0_34, %c4, %c0_35] : memref<1x8x16x10xf32, #tpu.memory_space<vmem>>, vector<1x8x10x10xf32>
    %cst_36 = arith.constant 0.606530666 : f32
    %36 = vector.broadcast %cst_36 : f32 to vector<1x8x10x10xf32>
    %37 = arith.mulf %36, %35 : vector<1x8x10x10xf32>
    %38 = arith.addf %34, %37 : vector<1x8x10x10xf32>
    %c0_37 = arith.constant 0 : index
    %c0_38 = arith.constant 0 : index
    %c5 = arith.constant 5 : index
    %c0_39 = arith.constant 0 : index
    %39 = vector.load %arg5[%c0_37, %c0_38, %c5, %c0_39] : memref<1x8x16x10xf32, #tpu.memory_space<vmem>>, vector<1x8x10x10xf32>
    %cst_40 = arith.constant 0.135335281 : f32
    %40 = vector.broadcast %cst_40 : f32 to vector<1x8x10x10xf32>
    %41 = arith.mulf %40, %39 : vector<1x8x10x10xf32>
    %42 = arith.addf %38, %41 : vector<1x8x10x10xf32>
    %c0_41 = arith.constant 0 : index
    %c0_42 = arith.constant 0 : index
    %c6 = arith.constant 6 : index
    %c0_43 = arith.constant 0 : index
    %43 = vector.load %arg5[%c0_41, %c0_42, %c6, %c0_43] : memref<1x8x16x10xf32, #tpu.memory_space<vmem>>, vector<1x8x10x10xf32>
    %cst_44 = arith.constant 0.0111089963 : f32
    %44 = vector.broadcast %cst_44 : f32 to vector<1x8x10x10xf32>
    %45 = arith.mulf %44, %43 : vector<1x8x10x10xf32>
    %46 = arith.addf %42, %45 : vector<1x8x10x10xf32>
    %cst_45 = arith.constant 0.000000e+00 : f32
    %47 = vector.broadcast %cst_45 : f32 to vector<1x3x10x10xf32>
    %c0_46 = arith.constant 0 : index
    %c0_47 = arith.constant 0 : index
    %c0_48 = arith.constant 0 : index
    %c0_49 = arith.constant 0 : index
    %48 = vector.load %arg6[%c0_46, %c0_47, %c0_48, %c0_49] : memref<1x14x10x10xf32, #tpu.memory_space<vmem>>, vector<1x3x10x10xf32>
    tpu.vector_store %arg6[%c0_46, %c0_47, %c0_48, %c0_49], %47 {strides = array<i32>} : memref<1x14x10x10xf32, #tpu.memory_space<vmem>>, vector<1x3x10x10xf32>,
    %c0_50 = arith.constant 0 : index
    %c11 = arith.constant 11 : index
    %c0_51 = arith.constant 0 : index
    %c0_52 = arith.constant 0 : index
    %49 = vector.load %arg6[%c0_50, %c11, %c0_51, %c0_52] : memref<1x14x10x10xf32, #tpu.memory_space<vmem>>, vector<1x3x10x10xf32>
    tpu.vector_store %arg6[%c0_50, %c11, %c0_51, %c0_52], %47 {strides = array<i32>} : memref<1x14x10x10xf32, #tpu.memory_space<vmem>>, vector<1x3x10x10xf32>,
    %c0_53 = arith.constant 0 : index
    %c3_54 = arith.constant 3 : index
    %c0_55 = arith.constant 0 : index
    %c0_56 = arith.constant 0 : index
    %50 = vector.load %arg6[%c0_53, %c3_54, %c0_55, %c0_56] : memref<1x14x10x10xf32, #tpu.memory_space<vmem>>, vector<1x8x10x10xf32>
    tpu.vector_store %arg6[%c0_53, %c3_54, %c0_55, %c0_56], %46 {strides = array<i32>} : memref<1x14x10x10xf32, #tpu.memory_space<vmem>>, vector<1x8x10x10xf32>,
    %c0_57 = arith.constant 0 : index
    %c0_58 = arith.constant 0 : index
    %c0_59 = arith.constant 0 : index
    %c0_60 = arith.constant 0 : index
    %51 = vector.load %arg6[%c0_57, %c0_58, %c0_59, %c0_60] : memref<1x14x10x10xf32, #tpu.memory_space<vmem>>, vector<1x8x10x10xf32>
    %cst_61 = arith.constant 0.0111089963 : f32
    %52 = vector.broadcast %cst_61 : f32 to vector<1x8x10x10xf32>
    %53 = arith.mulf %52, %51 : vector<1x8x10x10xf32>
    %c0_62 = arith.constant 0 : index
    %c1_63 = arith.constant 1 : index
    %c0_64 = arith.constant 0 : index
    %c0_65 = arith.constant 0 : index
    %54 = vector.load %arg6[%c0_62, %c1_63, %c0_64, %c0_65] : memref<1x14x10x10xf32, #tpu.memory_space<vmem>>, vector<1x8x10x10xf32>
    %cst_66 = arith.constant 0.135335281 : f32
    %55 = vector.broadcast %cst_66 : f32 to vector<1x8x10x10xf32>
    %56 = arith.mulf %55, %54 : vector<1x8x10x10xf32>
    %57 = arith.addf %53, %56 : vector<1x8x10x10xf32>
    %c0_67 = arith.constant 0 : index
    %c2_68 = arith.constant 2 : index
    %c0_69 = arith.constant 0 : index
    %c0_70 = arith.constant 0 : index
    %58 = vector.load %arg6[%c0_67, %c2_68, %c0_69, %c0_70] : memref<1x14x10x10xf32, #tpu.memory_space<vmem>>, vector<1x8x10x10xf32>
    %cst_71 = arith.constant 0.606530666 : f32
    %59 = vector.broadcast %cst_71 : f32 to vector<1x8x10x10xf32>
    %60 = arith.mulf %59, %58 : vector<1x8x10x10xf32>
    %61 = arith.addf %57, %60 : vector<1x8x10x10xf32>
    %c0_72 = arith.constant 0 : index
    %c3_73 = arith.constant 3 : index
    %c0_74 = arith.constant 0 : index
    %c0_75 = arith.constant 0 : index
    %62 = vector.load %arg6[%c0_72, %c3_73, %c0_74, %c0_75] : memref<1x14x10x10xf32, #tpu.memory_space<vmem>>, vector<1x8x10x10xf32>
    %cst_76 = arith.constant 1.000000e+00 : f32
    %63 = vector.broadcast %cst_76 : f32 to vector<1x8x10x10xf32>
    %64 = arith.mulf %63, %62 : vector<1x8x10x10xf32>
    %65 = arith.addf %61, %64 : vector<1x8x10x10xf32>
    %c0_77 = arith.constant 0 : index
    %c4_78 = arith.constant 4 : index
    %c0_79 = arith.constant 0 : index
    %c0_80 = arith.constant 0 : index
    %66 = vector.load %arg6[%c0_77, %c4_78, %c0_79, %c0_80] : memref<1x14x10x10xf32, #tpu.memory_space<vmem>>, vector<1x8x10x10xf32>
    %cst_81 = arith.constant 0.606530666 : f32
    %67 = vector.broadcast %cst_81 : f32 to vector<1x8x10x10xf32>
    %68 = arith.mulf %67, %66 : vector<1x8x10x10xf32>
    %69 = arith.addf %65, %68 : vector<1x8x10x10xf32>
    %c0_82 = arith.constant 0 : index
    %c5_83 = arith.constant 5 : index
    %c0_84 = arith.constant 0 : index
    %c0_85 = arith.constant 0 : index
    %70 = vector.load %arg6[%c0_82, %c5_83, %c0_84, %c0_85] : memref<1x14x10x10xf32, #tpu.memory_space<vmem>>, vector<1x8x10x10xf32>
    %cst_86 = arith.constant 0.135335281 : f32
    %71 = vector.broadcast %cst_86 : f32 to vector<1x8x10x10xf32>
    %72 = arith.mulf %71, %70 : vector<1x8x10x10xf32>
    %73 = arith.addf %69, %72 : vector<1x8x10x10xf32>
    %c0_87 = arith.constant 0 : index
    %c6_88 = arith.constant 6 : index
    %c0_89 = arith.constant 0 : index
    %c0_90 = arith.constant 0 : index
    %74 = vector.load %arg6[%c0_87, %c6_88, %c0_89, %c0_90] : memref<1x14x10x10xf32, #tpu.memory_space<vmem>>, vector<1x8x10x10xf32>
    %cst_91 = arith.constant 0.0111089963 : f32
    %75 = vector.broadcast %cst_91 : f32 to vector<1x8x10x10xf32>
    %76 = arith.mulf %75, %74 : vector<1x8x10x10xf32>
    %77 = arith.addf %73, %76 : vector<1x8x10x10xf32>
    %78 = arith.mulf %77, %77 : vector<1x8x10x10xf32>
    %79 = vector.shape_cast %78 : vector<1x8x10x10xf32> to vector<1x1x8x10x10xf32>
    %cst_92 = arith.constant dense<0.000000e+00> : vector<1xf32>
    %80 = vector.multi_reduction <add>, %79, %cst_92 [1, 2, 3, 4] : vector<1x1x8x10x10xf32> to vector<1xf32>
    %81 = vector.shape_cast %80 : vector<1xf32> to vector<1x1x1x1x1xf32>
    %82 = vector.extract %81[0, 0, 0, 0, 0] : f32 from vector<1x1x1x1x1xf32>
    %83 = vector.broadcast %82 : f32 to vector<1x1x128xf32>
    %c0_93 = arith.constant 0 : index
    %c0_94 = arith.constant 0 : index
    %c0_95 = arith.constant 0 : index
    %84 = vector.load %arg4[%c0_93, %c0_94, %c0_95] : memref<1x3x128xf32, #tpu.memory_space<vmem>>, vector<1x1x128xf32>
    tpu.vector_store %arg4[%c0_93, %c0_94, %c0_95], %83 {strides = array<i32>} : memref<1x3x128xf32, #tpu.memory_space<vmem>>, vector<1x1x128xf32>,
    %85 = vector.broadcast %9 : f32 to vector<1x1x128xf32>
    %c0_96 = arith.constant 0 : index
    %c1_97 = arith.constant 1 : index
    %c0_98 = arith.constant 0 : index
    %86 = vector.load %arg4[%c0_96, %c1_97, %c0_98] : memref<1x3x128xf32, #tpu.memory_space<vmem>>, vector<1x1x128xf32>
    tpu.vector_store %arg4[%c0_96, %c1_97, %c0_98], %85 {strides = array<i32>} : memref<1x3x128xf32, #tpu.memory_space<vmem>>, vector<1x1x128xf32>,
    %87 = vector.broadcast %14 : f32 to vector<1x1x128xf32>
    %c0_99 = arith.constant 0 : index
    %c2_100 = arith.constant 2 : index
    %c0_101 = arith.constant 0 : index
    %88 = vector.load %arg4[%c0_99, %c2_100, %c0_101] : memref<1x3x128xf32, #tpu.memory_space<vmem>>, vector<1x1x128xf32>
    tpu.vector_store %arg4[%c0_99, %c2_100, %c0_101], %87 {strides = array<i32>} : memref<1x3x128xf32, #tpu.memory_space<vmem>>, vector<1x1x128xf32>,
    return
  }
  func.func @transform_0(%arg0: i32) -> (i32, i32, i32, i32) {
    %c0_i32 = arith.constant 0 : i32
    %c0_i32_0 = arith.constant 0 : i32
    %c0_i32_1 = arith.constant 0 : i32
    %c0_i32_2 = arith.constant 0 : i32
    return %arg0, %c0_i32, %c0_i32_0, %c0_i32_1 : i32, i32, i32, i32
  }
  func.func @transform_1(%arg0: i32) -> (i32, i32, i32, i32) {
    %c0_i32 = arith.constant 0 : i32
    %c0_i32_0 = arith.constant 0 : i32
    %c0_i32_1 = arith.constant 0 : i32
    %c0_i32_2 = arith.constant 0 : i32
    return %arg0, %c0_i32, %c0_i32_0, %c0_i32_1 : i32, i32, i32, i32
  }
  func.func @transform_2(%arg0: i32) -> (i32, i32) {
    %c0_i32 = arith.constant 0 : i32
    %c0_i32_0 = arith.constant 0 : i32
    %c0_i32_1 = arith.constant 0 : i32
    return %c0_i32, %c0_i32_0 : i32, i32
  }
  func.func @transform_3(%arg0: i32) -> (i32, i32, i32) {
    %c0_i32 = arith.constant 0 : i32
    %c0_i32_0 = arith.constant 0 : i32
    %c0_i32_1 = arith.constant 0 : i32
    return %arg0, %c0_i32, %c0_i32_0 : i32, i32, i32
  }
}

</mosaic_0001>

<bundles_post_ra>
// kernel: tpu_custom_call.1
= control target key start
LH: loop header
LB: loop body
LE: loop exit
PB: predicated region body
PF: predicated region fallthrough
CT: control target
= control target key end

     0   :  { %8 = vsyncpa [#allocation5], 0  ;;  %s2306_s0 = inlined_call_operand.hbm [shape: f32[2,8,16,16], index: 0, kind: input, shape index: {}]   ;;  %s2307_s1 = inlined_call_operand.hbm [shape: f32[2,8,16,16], index: 1, kind: input, shape index: {}]   ;;  %s2308_s2 = inlined_call_operand.hbm [shape: f32[16,10], index: 2, kind: input, shape index: {}]   ;;  %s2309_s3 = inlined_call_operand.vmem [shape: f32[2,3,128], index: 3, kind: output, shape index: {}]  }
   0x1   :  { %10 = vsyncpa [#allocation5 + $0x1], 0 }
   0x2   :  { %11 = vsyncpa [#allocation7], 0 }
   0x3   :  { %13 = vsyncpa [#allocation7 + $0x1], 0  ;;  %s1744_s12 = smov 0   ;;  %s1746_s13 = smov 0  }
   0x4   :  { %s1748_s14 = smov 0   ;;  %s1750_s15 = smov 0  }
   0x5 LB: > { %s1763_s16 = sadd.s32 4294967295, %s1716_s15   ;;  %p39_p0 = scmp.ne.s32.totalorder %s1708_s13, %s1704_s12  ;;  %s1716_s15 = sphi %s1750_s15, %s2324_s15   ;;  %s1712_s14 = sphi %s1748_s14, %s2323_s14   ;;  %s1708_s13 = sphi %s1746_s13, %s2322_s13   ;;  %s1704_s12 = sphi %s1744_s12, %s2321_s12  }
   0x6   : > { %p2310_p1 = scmp.eq.s32.totalorder %s1763_s16, 0  ;;  %p1436_p2 = scmp.ge.s32.totalorder %s1716_s15, 1 }
   0x7   : > { %p123_p3 = scmp.lt.s32.totalorder %s1716_s15, 3  ;;  %s1718_s19 = smov [#allocation8]  }
   0x8   : > { %p1771_p4 = por %p2310_p1, %p39_p0  ;;  %s135_s20 = sshll.u32 %s1718_s19, 4  ;;  %s136_s20 = int_to_ptr.vmem [resolvable:$true] %s135_s20 }
   0x9   : > { %p1775_p5 = pnand %p1436_p2, %p123_p3  ;;  %s1788_s22 = sadd.s32 1, %s1716_s15  }
   0xa   : > { %s2313_s17 = scalar_select %p1771_p4, 1, 0 }
   0xb   : > { %s2314_s18 = scalar_select %p1775_p5, 1, 0 }
   0xc   : > { %p1536_p6 = pneg %p1775_p5  ;;  %s26_s23 = sadd.s32 1, %s1712_s14 }
   0xd   : > { %s23_s24 = ssub.s32 %s1716_s15, %s1788_s22  ;;  %s1586_s27 = scalar_lea.hbm %s2308_s2, 256 }
   0xe   : > { %p1783_p7 = pnand %p1536_p6, %p2310_p1  ;;  %p1587_p8 = scmp.ne.s32.totalorder %s2308_s2, %s1586_s27 }
   0xf   : > { %p1593_p12 = scmp.lt.u32.totalorder %s1586_s27, %s2308_s2 }
  0x10   : > { %p1588_p9 = pneg %p1783_p7 }
  0x12   : > { %p1589_p10 = pnand %p1588_p9, %p1587_p8 }
  0x14   : > { %p1590_p11 = pneg %p1589_p10 }
  0x16   : > { %p1595_p13 = pnand %p1593_p12, %p1590_p11 }
  0x18   : > { %1598 = shalt.err (!%p1595_p13)
}
  0x19   : > { %s1599_s5 = scalar_lea.vmem %s136_s20, 256  ;;  %p1607_p6 = scmp.lt.s32.totalorder %s136_s20, %s136_s20 }
  0x1a   : > { %p1600_p0 = scmp.ne.s32.totalorder %s136_s20, %s1599_s5  ;;  %p1608_p1 = scmp.lt.s32.totalorder %s1599_s5, %s1599_s5 }
  0x1c   : > { %p1602_p2 = pnand %p1600_p0, %p1588_p9  ;;  %p1609_p4 = por %p1608_p1, %p1607_p6 }
  0x1e   : > { %p1603_p3 = pneg %p1602_p2 }
  0x20   : > { %p1610_p5 = pnand %p1609_p4, %p1603_p3 }
  0x22   : > { %1613 = shalt.err (!%p1610_p5)
}
  0x23   : > { %s1719_s6 = smov 128   ;;  %s1720_s7 = smov 8  }
  0x24   : > { %1539 = dma.hbm_to_vmem [thread:$0]  (!%p1783_p7), %s2308_s2, 256, %s136_s20, [#allocation7], %s1719_s6, %s1719_s6, %s1720_s7  }
  0x25   : > { %p24_p1 = scmp.eq.s32.totalorder %s23_s24, 0  ;;  %p33_p4 = scmp.ne.s32.totalorder %s1712_s14, %s1708_s13 }
  0x26   : > { %p34_p5 = scmp.eq.s32.totalorder %s1716_s15, 0  ;;  %p1548_p8 = scmp.lt.s32.totalorder %s1716_s15, 2 }
  0x27   : > { %s1817_s10 = scalar_select %p24_p1, %s1712_s14, %s26_s23  }
  0x28   : > { %p35_p9 = por %p34_p5, %p33_p4  ;;  %s149_s11 = sand.u32 1, %s1712_s14  }
  0x29   : > { %s1439_s12 = sshll.u32 %s149_s11, 7  ;;  %s1468_s19 = sshll.u32 %s1716_s15, 11 }
  0x2a   : > { %s1824_s21 = scalar_lea.hbm %s2306_s0, %s1468_s19  ;;  %s153_s27 = scalar_lea.vmem [#allocation4], %s1439_s12 }
  0x2b   : > { %s160_s20 = sshll.u32 %s153_s27, 4  ;;  %p1828_p7 = pnand %p1548_p8, %p35_p9  ;;  %s1826_s20 = int_to_ptr.vmem [resolvable:$true] %s160_s20 }
  0x2c   : > { %s1835_s29 = scalar_lea.hbm %s2307_s1, %s1468_s19  ;;  %s174_s30 = scalar_lea.vmem [#allocation6], %s1439_s12 }
  0x2d   : > { %s1837_s4 = sshll.u32 %s174_s30, 4  ;;  %s1839_s5 = scalar_lea.sflag [#allocation5], %s149_s11  ;;  %s1871_s4 = int_to_ptr.vmem [resolvable:$true] %s1837_s4 }
  0x2e   : > { %s1614_s8 = scalar_lea.hbm %s1824_s21, 2048  ;;  %p1616_p11 = pneg %p1828_p7 }
  0x2f   : > { %p1615_p10 = scmp.ne.s32.totalorder %s1824_s21, %s1614_s8  ;;  %s1619_s26 = scalar_lea.hbm %s2306_s0, 4096 }
  0x30   : > { %p1620_p0 = scmp.lt.u32.totalorder %s1824_s21, %s2306_s0  ;;  %p1621_p2 = scmp.lt.u32.totalorder %s1619_s26, %s1614_s8 }
  0x31   : > { %p1617_p12 = pnand %p1616_p11, %p1615_p10  ;;  %p1623_p6 = scmp.lt.u32.totalorder %s1614_s8, %s1824_s21 }
  0x32   : > { %p1622_p3 = por %p1621_p2, %p1620_p0 }
  0x33   : > { %p1618_p13 = pneg %p1617_p12 }
  0x34   : > { %p1624_p1 = por %p1623_p6, %p1622_p3 }
  0x36   : > { %p1625_p4 = pnand %p1624_p1, %p1618_p13 }
  0x38   : > { %1628 = shalt.err (!%p1625_p4)
}
  0x39   : > { %s1629_s11 = scalar_lea.vmem %s1826_s20, 2048  ;;  %s1721_s12 = smov [#allocation4]  }
  0x3a   : > { %p1630_p5 = scmp.ne.s32.totalorder %s1826_s20, %s1629_s11  ;;  %s1634_s24 = sshll.u32 %s1721_s12, 4  ;;  %s1635_s24 = int_to_ptr.vmem [resolvable:$false] %s1634_s24 }
  0x3b   : > { %s1636_s28 = scalar_lea.vmem %s1635_s24, 4096  ;;  %p1637_p10 = scmp.lt.s32.totalorder %s1826_s20, %s1635_s24 }
  0x3c   : > { %p1632_p8 = pnand %p1630_p5, %p1616_p11  ;;  %p1638_p12 = scmp.lt.s32.totalorder %s1636_s28, %s1629_s11 }
  0x3e   : > { %p1633_p9 = pneg %p1632_p8  ;;  %p1639_p0 = por %p1638_p12, %p1637_p10 }
  0x40   : > { %p1640_p2 = pnand %p1639_p0, %p1633_p9 }
  0x42   : > { %1643 = shalt.err (!%p1640_p2)
}
  0x43   : > { %1543 = dma.hbm_to_vmem [thread:$0]  (!%p1828_p7), %s1824_s21, 2048, %s1826_s20, %s1839_s5, %s1719_s6, %s1719_s6, %s1720_s7  }
  0x44   : > { %s170_s30 = sand.u32 1, %s1716_s15   ;;  %s1644_s9 = scalar_lea.hbm %s1835_s29, 2048 }
  0x45   : > { %s1874_s8 = scalar_lea.sflag [#allocation7], %s170_s30  ;;  %p1645_p13 = scmp.ne.s32.totalorder %s1835_s29, %s1644_s9 }
  0x46   : > { %s1649_s27 = scalar_lea.hbm %s2307_s1, 4096  ;;  %p1650_p1 = scmp.lt.u32.totalorder %s1835_s29, %s2307_s1 }
  0x47   : > { %p1647_p3 = pnand %p1645_p13, %p1616_p11  ;;  %p1651_p4 = scmp.lt.u32.totalorder %s1649_s27, %s1644_s9 }
  0x48   : > { %p1653_p8 = scmp.lt.u32.totalorder %s1644_s9, %s1835_s29 }
  0x49   : > { %p1648_p6 = pneg %p1647_p3  ;;  %p1652_p5 = por %p1651_p4, %p1650_p1 }
  0x4b   : > { %p1654_p9 = por %p1653_p8, %p1652_p5 }
  0x4d   : > { %p1655_p10 = pnand %p1654_p9, %p1648_p6 }
  0x4f   : > { %1658 = shalt.err (!%p1655_p10)
}
  0x50   : > { %s1659_s15 = scalar_lea.vmem %s1871_s4, 2048  ;;  %s1722_s21 = smov [#allocation6]  }
  0x51   : > { %p1660_p12 = scmp.ne.s32.totalorder %s1871_s4, %s1659_s15  ;;  %s1664_s20 = sshll.u32 %s1722_s21, 4  ;;  %s1665_s20 = int_to_ptr.vmem [resolvable:$false] %s1664_s20 }
  0x52   : > { %s1666_s5 = scalar_lea.vmem %s1665_s20, 4096  ;;  %p1667_p13 = scmp.lt.s32.totalorder %s1871_s4, %s1665_s20 }
  0x53   : > { %p1662_p0 = pnand %p1660_p12, %p1616_p11  ;;  %p1668_p3 = scmp.lt.s32.totalorder %s1666_s5, %s1659_s15 }
  0x55   : > { %p1663_p2 = pneg %p1662_p0  ;;  %p1669_p1 = por %p1668_p3, %p1667_p13 }
  0x57   : > { %p1670_p4 = pnand %p1669_p1, %p1663_p2 }
  0x59   : > { %1673 = shalt.err (!%p1670_p4)
}
  0x5a   : > { %1546 = dma.hbm_to_vmem [thread:$0]  (!%p1828_p7), %s1835_s29, 2048, %s1871_s4, %s1874_s8, %s1719_s6, %s1719_s6, %s1720_s7  }
  0x5b   : > { %p2317_p11 = scmp.ne.s32.totalorder %s2314_s18, 0 }
  0x5c   : > { %s195_s12 = sand.u32 (!%p2317_p11), 1, %s1708_s13   ;;  %p2318_p6 = scmp.ne.s32.totalorder (!%p2317_p11), %s2313_s17, 0 }
  0x5d   : > { %193 = sbr.rel (%p2317_p11) target bundleno = 689 (0x2b1), region = 32  ;;  %s1446_s24 = sshll.u32 (!%p2317_p11), %s195_s12, 7 }
  0x5e   : > { %s196_s28 = scalar_lea.sflag (!%p2317_p11), [#allocation5], %s195_s12  ;;  %s1906_s30 = scalar_lea.vmem (!%p2317_p11), [#allocation4], %s1446_s24 }
  0x64   : > { %1691 = dma.done.wait (%p2318_p6), %s196_s28, 2048  }
  0x65   : > { %1693 = vsyncadd (%p2318_p6), %s196_s28, 4294965248  ;;  %s204_s23 = sand.u32 1, %s1763_s16   ;;  %s1913_s6 = scalar_lea.vmem [#allocation6], %s1446_s24 }
  0x66   : > { %s205_s9 = scalar_lea.sflag [#allocation7], %s204_s23 }
  0x67   : > { %1695 = dma.done.wait (%p2318_p6), %s205_s9, 2048  }
  0x68   : > { %1697 = vsyncadd (%p2318_p6), %s205_s9, 4294965248  ;;  %p2319_p7 = scmp.eq.s32.totalorder %s1763_s16, 0 }
  0x6a   : > { %1699 = dma.done.wait (%p2319_p7), [#allocation7], 256   ;;  %p2320_p5 = pmov %p2319_p7 }
  0x6b   : > { %v420_v0 = vld [vmem:[#allocation8] sm:$0xff]  ;;  %v421_v1 = vld [vmem:[#allocation8 + $0x8] sm:$0xff]  ;;  %v1927_v6 = vld [vmem:[%s1906_s30 + $0x10] sm:$0xff]  ;;  %vm323_vm0 = vcmask 130048   ;;  %vm937_vm1 = vcmask 74752   ;;  %vm615_vm2 = vcmask 80896  }
  0x6c   : > { %1701 = vsyncadd (%p2320_p5), [#allocation7], 4294967040  ;;  %v1516_v2 = vpack.c.bf16 %v421_v1, %v420_v0  ;;  %v243_v3 = vld [vmem:[%s1906_s30] sm:$0xff]  ;;  %v244_v4 = vld [vmem:[%s1906_s30 + $0x8] sm:$0xff]  ;;  %p239_p8 = scmp.lt.s32.totalorder %s1763_s16, 1 }
  0x6d   : > { %v259_v5 = vld [vmem:[%s1913_s6] sm:$0xff]  ;;  %v260_v7 = vld [vmem:[%s1913_s6 + $0x8] sm:$0xff]  ;;  %v1931_v8 = vld [vmem:[%s1913_s6 + $0x10] sm:$0xff] }
  0x6e   : > { %v275_v9 = vmul.f32 800.0, %v259_v5  ;;  %v307_v10 = vmul.f32 %v259_v5, %v243_v3  ;;  %v364_v11 = vmul.f32 %v259_v5, %v259_v5  ;;  %1517 = vmatprep.subr.bf16.mxu0 %v1516_v2  ;;  %1520 = vmatprep.subr.bf16.mxu1 %v1516_v2  ;;  %v308_v12 = vmul.f32 %v260_v7, %v244_v4  ;;  %v1936_v15 = vld [vmem:[%s1906_s30 + $0x18] sm:$0xff]  ;;  %v1943_v21 = vld [vmem:[%s1906_s30 + $0x20] sm:$0xff]  ;;  %v1946_v22 = vld [vmem:[%s1906_s30 + $0x28] sm:$0xff]  ;;  %s2326_s16 = smov (!%p239_p8, %s1763_s16), 1 }
  0x6f   : > { %v309_v13 = vmul.f32 %v1931_v8, %v1927_v6  ;;  %v365_v14 = vmul.f32 %v260_v7, %v260_v7  ;;  %v276_v16 = vmul.f32 800.0, %v260_v7  ;;  %1519 = vmatpush3.bf16.msra.mxu0 %v1516_v2  ;;  %1521 = vmatpush3.bf16.msra.mxu1 %v1516_v2  ;;  %v366_v19 = vmul.f32 %v1931_v8, %v1931_v8  ;;  %v1949_v23 = vld [vmem:[%s1906_s30 + $0x30] sm:$0xff]  ;;  %v251_v27 = vld [vmem:[%s1906_s30 + $0x40] sm:$0xff]  ;;  %v262_v28 = vld [vmem:[%s1913_s6 + $0x18] sm:$0xff]  ;;  %s1449_s17 = sshll.u32 %s2326_s16, 2 }
  0x70   : > { %v291_v17 = vsub.f32 %v243_v3, %v275_v9  ;;  %v324_v18 = vsel %vm323_vm0, %v307_v10, 0.0  ;;  %v380_v20 = vsel %vm323_vm0, %v364_v11, 0.0  ;;  %v325_v24 = vsel %vm323_vm0, %v308_v12, 0.0  ;;  %v1957_v29 = vld [vmem:[%s1913_s6 + $0x20] sm:$0xff]  ;;  %v1962_v34 = vld [vmem:[%s1913_s6 + $0x28] sm:$0xff]  ;;  %v1965_v35 = vld [vmem:[%s1913_s6 + $0x30] sm:$0xff]  ;;  %s242_s29 = scalar_lea.vmem %s2309_s3, %s1449_s17 }
  0x71   : > { %v327_v25 = vsel %vm323_vm0, %v309_v13, 0.0  ;;  %v381_v26 = vsel %vm323_vm0, %v365_v14, 0.0  ;;  %v292_v30 = vsub.f32 %v244_v4, %v276_v16  ;;  %v326_v31 = vadd.f32 %v325_v24, %v324_v18  ;;  %v267_v36 = vld [vmem:[%s1913_s6 + $0x40] sm:$0xff]  ;;  %v1970_v38 = vld [vmem:[%s1906_s30 + $0x38] sm:$0xff]  ;;  %v252_v46 = vld [vmem:[%s1906_s30 + $0x48] sm:$0xff] }
  0x72   : > { %v382_v32 = vadd.f32 %v381_v26, %v380_v20  ;;  %v383_v33 = vsel %vm323_vm0, %v366_v19, 0.0  ;;  %1492 = vmatprep.mubr.msk.f32.mxu0 %vm323_vm0, %v291_v17  ;;  %v310_v37 = vmul.f32 %v262_v28, %v1936_v15  ;;  %v1973_v39 = vld [vmem:[%s1913_s6 + $0x38] sm:$0xff]  ;;  %v283_v40 = vmul.f32 800.0, %v267_v36  ;;  %v268_v47 = vld [vmem:[%s1913_s6 + $0x48] sm:$0xff]  ;;  %v2004_v4 = vld [vmem:[%s1913_s6 + $0x50] sm:$0xff] }
  0x73   : > { %v311_v41 = vmul.f32 %v1957_v29, %v1943_v21  ;;  %v312_v42 = vmul.f32 %v1962_v34, %v1946_v22  ;;  %v313_v43 = vmul.f32 %v1965_v35, %v1949_v23  ;;  %1493 = vmatmul.mubr.msk.f32.vlgmr.msra.gmra.mrb[0].mxu0 %vm323_vm0, %v292_v30  ;;  %v328_v44 = vadd.f32 %v327_v25, %v326_v31  ;;  %v253_v16 = vld [vmem:[%s1906_s30 + $0x50] sm:$0xff]  ;;  %v2014_v24 = vld [vmem:[%s1913_s6 + $0x58] sm:$0xff]  ;;  %v2021_v31 = vld [vmem:[%s1913_s6 + $0x60] sm:$0xff] }
  0x74   : > { %v384_v45 = vadd.f32 %v383_v33, %v382_v32  ;;  %v314_v48 = vmul.f32 %v1973_v39, %v1970_v38  ;;  %v315_v49 = vmul.f32 %v267_v36, %v251_v27  ;;  %v299_v50 = vsub.f32 %v251_v27, %v283_v40  ;;  %v2026_v40 = vld [vmem:[%s1913_s6 + $0x68] sm:$0xff] }
  0x75   : > { %v316_v51 = vmul.f32 %v268_v47, %v252_v46  ;;  %v329_v52 = vsel %vm323_vm0, %v310_v37, 0.0  ;;  %v331_v53 = vsel %vm323_vm0, %v311_v41, 0.0  ;;  %v333_v55 = vsel %vm323_vm0, %v312_v42, 0.0  ;;  %v254_v37 = vld [vmem:[%s1906_s30 + $0x58] sm:$0xff] }
  0x76   : > { %v330_v54 = vadd.f32 %v329_v52, %v328_v44  ;;  %v335_v56 = vsel %vm323_vm0, %v313_v43, 0.0  ;;  %v337_v57 = vsel %vm323_vm0, %v314_v48, 0.0  ;;  %v367_v58 = vmul.f32 %v262_v28, %v262_v28  ;;  %1504 = vmatprep.mubr.msk.f32.mxu1 %vm323_vm0, %v299_v50  ;;  %v255_v44 = vld [vmem:[%s1906_s30 + $0x60] sm:$0xff]  ;;  %v256_v48 = vld [vmem:[%s1906_s30 + $0x68] sm:$0xff]  ;;  %v2047_v52 = vld [vmem:[%s1913_s6 + $0x78] sm:$0xff] }
  0x77   : > { %v368_v59 = vmul.f32 %v1957_v29, %v1957_v29  ;;  %v369_v61 = vmul.f32 %v1962_v34, %v1962_v34  ;;  %v370_v62 = vmul.f32 %v1965_v35, %v1965_v35  ;;  %v371_v63 = vmul.f32 %v1973_v39, %v1973_v39 }
  0x78   : > { %v332_v60 = vadd.f32 %v331_v53, %v330_v54  ;;  %v339_v0 = vsel %vm323_vm0, %v315_v49, 0.0  ;;  %v372_v1 = vmul.f32 %v267_v36, %v267_v36  ;;  %v385_v2 = vsel %vm323_vm0, %v367_v58, 0.0  ;;  %v2040_v49 = vld [vmem:[%s1913_s6 + $0x70] sm:$0xff] }
  0x79   : > { %v387_v3 = vsel %vm323_vm0, %v368_v59, 0.0  ;;  %v341_v7 = vsel %vm323_vm0, %v316_v51, 0.0  ;;  %v373_v9 = vmul.f32 %v268_v47, %v268_v47  ;;  %v386_v10 = vadd.f32 %v385_v2, %v384_v45 }
  0x7a   : > { %v334_v5 = vadd.f32 %v333_v55, %v332_v60  ;;  %v389_v11 = vsel %vm323_vm0, %v369_v61, 0.0  ;;  %v391_v12 = vsel %vm323_vm0, %v370_v62, 0.0  ;;  %v393_v13 = vsel %vm323_vm0, %v371_v63, 0.0  ;;  %v258_v60 = vld [vmem:[%s1906_s30 + $0x78] sm:$0xff] }
  0x7b   : > { %v284_v14 = vmul.f32 800.0, %v268_v47  ;;  %v388_v18 = vadd.f32 %v387_v3, %v386_v10  ;;  %v277_v19 = vmul.f32 800.0, %v1931_v8  ;;  %v285_v20 = vmul.f32 800.0, %v2004_v4 }
  0x7c   : > { %v336_v17 = vadd.f32 %v335_v56, %v334_v5  ;;  %v395_v25 = vsel %vm323_vm0, %v372_v1, 0.0  ;;  %v2018_v27 = vmul.f32 %v2004_v4, %v253_v16  ;;  %v278_v30 = vmul.f32 800.0, %v262_v28  ;;  %v257_v56 = vld [vmem:[%s1906_s30 + $0x70] sm:$0xff] }
  0x7d   : > { %v300_v26 = vsub.f32 %v252_v46, %v284_v14  ;;  %v390_v33 = vadd.f32 %v389_v11, %v388_v18  ;;  %v293_v36 = vsub.f32 %v1927_v6, %v277_v19  ;;  %v301_v8 = vsub.f32 %v253_v16, %v285_v20 }
  0x7e   : > { %v338_v32 = vadd.f32 %v337_v57, %v336_v17  ;;  %v397_v41 = vsel %vm323_vm0, %v373_v9, 0.0  ;;  %v294_v42 = vsub.f32 %v1936_v15, %v278_v30  ;;  %v286_v28 = vmul.f32 800.0, %v2014_v24 }
  0x7f   : > { %1505 = vmatmul.mubr.msk.f32.vlgmr.msra.gmra.mrb[0].mxu1 %vm323_vm0, %v300_v26  ;;  %v279_v43 = vmul.f32 800.0, %v1957_v29  ;;  %v392_v6 = vadd.f32 %v391_v12, %v390_v33  ;;  %1495 = vmatprep.mubr.msk.f32.mxu0 %vm323_vm0, %v293_v36  ;;  %v287_v46 = vmul.f32 800.0, %v2021_v31  ;;  %v280_v47 = vmul.f32 800.0, %v1962_v34 }
  0x80   : > { %v340_v45 = vadd.f32 %v339_v0, %v338_v32  ;;  %1507 = vmatprep.mubr.msk.f32.mxu1 %vm323_vm0, %v301_v8  ;;  %1496 = vmatmul.mubr.msk.f32.gmra.mrb[2].mxu0 %vm323_vm0, %v294_v42  ;;  %v302_v15 = vsub.f32 %v254_v37, %v286_v28  ;;  %v288_v50 = vmul.f32 800.0, %v2026_v40  ;;  %v281_v51 = vmul.f32 800.0, %v1965_v35 }
  0x81   : > { %v295_v29 = vsub.f32 %v1943_v21, %v279_v43  ;;  %v394_v54 = vadd.f32 %v393_v13, %v392_v6  ;;  %v303_v55 = vsub.f32 %v255_v44, %v287_v46  ;;  %v296_v34 = vsub.f32 %v1946_v22, %v280_v47 }
  0x82   : > { %v342_v53 = vadd.f32 %v341_v7, %v340_v45  ;;  %v304_v57 = vsub.f32 %v256_v48, %v288_v50  ;;  %v297_v21 = vsub.f32 %v1949_v23, %v281_v51  ;;  %v289_v58 = vmul.f32 800.0, %v2040_v49 }
  0x83   : > { %1508 = vmatmul.mubr.msk.f32.gmra.mrb[2].mxu1 %vm323_vm0, %v302_v15  ;;  %1498 = vmatprep.mubr.msk.f32.mxu0 %vm323_vm0, %v295_v29  ;;  %v282_v59 = vmul.f32 800.0, %v1973_v39  ;;  %v396_v35 = vadd.f32 %v395_v25, %v394_v54  ;;  %v290_v61 = vmul.f32 800.0, %v2047_v52  ;;  %v1723_v39 = vmov 0.0  }
  0x84   : > { %1510 = vmatprep.mubr.msk.f32.mxu1 %vm323_vm0, %v303_v55  ;;  %1499 = vmatmul.mubr.msk.f32.gmra.mrb[4].mxu0 %vm323_vm0, %v296_v34  ;;  %v305_v22 = vsub.f32 %v257_v56, %v289_v58  ;;  %936 = vst.msk [vmem:[#allocation3] sm:$0xff] %vm615_vm2, %v1723_v39  ;;  %939 = vst.msk [vmem:[#allocation3 + $0x10] sm:$0xff] %vm615_vm2, %v1723_v39  ;;  %v374_v0 = vmul.f32 %v2004_v4, %v2004_v4  ;;  %v343_v3 = vsel %vm323_vm0, %v2018_v27, 0.0 }
  0x85   : > { %v298_v62 = vsub.f32 %v1970_v38, %v282_v59  ;;  %v398_v63 = vadd.f32 %v397_v41, %v396_v35  ;;  %1501 = vmatprep.mubr.msk.f32.mxu0 %vm323_vm0, %v297_v21  ;;  %v306_v23 = vsub.f32 %v258_v60, %v290_v61  ;;  %938 = vst.msk [vmem:[#allocation3 + $0x8] sm:$0x3] %vm937_vm1, %v1723_v39  ;;  %940 = vst.msk [vmem:[#allocation3 + $0x18] sm:$0x3] %vm937_vm1, %v1723_v39 }
  0x86   : > { %941 = vst.msk [vmem:[#allocation3 + $0x20] sm:$0xff] %vm615_vm2, %v1723_v39  ;;  %944 = vst.msk [vmem:[#allocation3 + $0xb0] sm:$0xff] %vm615_vm2, %v1723_v39  ;;  %v318_v38 = vmul.f32 %v2014_v24, %v254_v37  ;;  %v319_v1 = vmul.f32 %v2021_v31, %v255_v44  ;;  %v320_v2 = vmul.f32 %v2026_v40, %v256_v48  ;;  %v399_v14 = vsel %vm323_vm0, %v374_v0, 0.0 }
  0x87   : > { %1511 = vmatmul.mubr.msk.f32.gmra.mrb[4].mxu1 %vm323_vm0, %v304_v57  ;;  %942 = vst.msk [vmem:[#allocation3 + $0x28] sm:$0x3] %vm937_vm1, %v1723_v39  ;;  %945 = vst.msk [vmem:[#allocation3 + $0xb8] sm:$0x3] %vm937_vm1, %v1723_v39  ;;  %v375_v7 = vmul.f32 %v2014_v24, %v2014_v24  ;;  %v344_v9 = vadd.f32 %v343_v3, %v342_v53  ;;  %v376_v10 = vmul.f32 %v2021_v31, %v2021_v31 }
  0x88   : > { %1513 = vmatprep.mubr.msk.f32.mxu1 %vm323_vm0, %v305_v22  ;;  %1502 = vmatmul.mubr.msk.f32.gmra.mrb[6].mxu0 %vm323_vm0, %v298_v62  ;;  %946 = vst.msk [vmem:[#allocation3 + $0xc0] sm:$0xff] %vm615_vm2, %v1723_v39  ;;  %948 = vst.msk [vmem:[#allocation3 + $0xd0] sm:$0xff] %vm615_vm2, %v1723_v39  ;;  %v345_v5 = vsel %vm323_vm0, %v318_v38, 0.0  ;;  %v321_v11 = vmul.f32 %v2040_v49, %v257_v56  ;;  %v347_v4 = vsel %vm323_vm0, %v319_v1, 0.0  ;;  %v349_v18 = vsel %vm323_vm0, %v320_v2, 0.0 }
  0x89   : > { %947 = vst.msk [vmem:[#allocation3 + $0xc8] sm:$0x3] %vm937_vm1, %v1723_v39  ;;  %949 = vst.msk [vmem:[#allocation3 + $0xd8] sm:$0x3] %vm937_vm1, %v1723_v39  ;;  %v346_v12 = vadd.f32 %v345_v5, %v344_v9  ;;  %v377_v13 = vmul.f32 %v2026_v40, %v2026_v40  ;;  %v401_v16 = vsel %vm323_vm0, %v375_v7, 0.0  ;;  %v322_v17 = vmul.f32 %v2047_v52, %v258_v60 }
  0x8a   : > { %v400_v19 = vadd.f32 %v399_v14, %v398_v63  ;;  %v378_v24 = vmul.f32 %v2040_v49, %v2040_v49  ;;  %v403_v25 = vsel %vm323_vm0, %v376_v10, 0.0  ;;  %v351_v26 = vsel %vm323_vm0, %v321_v11, 0.0 }
  0x8b   : > { %1514 = vmatmul.mubr.msk.f32.gmra.mrb[6].mxu1 %vm323_vm0, %v306_v23  ;;  %v348_v20 = vadd.f32 %v347_v4, %v346_v12  ;;  %v379_v31 = vmul.f32 %v2047_v52, %v2047_v52  ;;  %v405_v32 = vsel %vm323_vm0, %v377_v13, 0.0  ;;  %v353_v33 = vsel %vm323_vm0, %v322_v17, 0.0 }
  0x8c   : > { %v402_v27 = vadd.f32 %v401_v16, %v400_v19  ;;  %v407_v37 = vsel %vm323_vm0, %v378_v24, 0.0 }
  0x8d   : > { %v350_v30 = vadd.f32 %v349_v18, %v348_v20  ;;  %v409_v42 = vsel %vm323_vm0, %v379_v31, 0.0 }
  0x8e   : > { %v404_v36 = vadd.f32 %v403_v25, %v402_v27 }
  0x8f   : > { %v352_v8 = vadd.f32 %v351_v26, %v350_v30 }
  0x90   : > { %v406_v40 = vadd.f32 %v405_v32, %v404_v36 }
  0x91   : > { %v354_v41 = vadd.f32 %v353_v33, %v352_v8 }
  0x92   : > { %v408_v28 = vadd.f32 %v407_v37, %v406_v40 }
  0x93   : > { %355 = vadd.xlane.f32.xlu0 %v354_v41 }
  0x94   : > { %v410_v43 = vadd.f32 %v409_v42, %v408_v28 }
  0x97   : > { %411 = vadd.xlane.f32.xlu0 %v410_v43 }
 0x146   : > { %v1494_v44 = vpop.f32.mrb[0].mxu0 }
 0x147   : > { %617 = vst.msk [vmem:[#allocation2 + $0x8] sm:$0xff] %vm615_vm2, %v1494_v44  ;;  %v536_v45 = vpop.f32.mrb[1].mxu0 }
 0x148   : > { %616 = vst.msk [vmem:[#allocation2] sm:$0xff] %vm615_vm2, %v536_v45 }
 0x14e   : > { %v633_v6 = vld [vmem:[#allocation2 + $0x8] sm:$0x3]  ;;  %v713_v47 = vld [vmem:[#allocation2 + $0xa] sm:$0x3]  ;;  %v793_v50 = vld [vmem:[#allocation2 + $0xc] sm:$0x3] }
 0x14f   : > { %v665_v46 = vld [vmem:[#allocation2 + $0x9] sm:$0x3]  ;;  %v649_v48 = vmul.f32 0.011108996, %v633_v6  ;;  %v729_v29 = vmul.f32 0.60653067, %v713_v47 }
 0x150   : > { %v681_v49 = vmul.f32 0.13533528, %v665_v46  ;;  %v632_v51 = vld [vmem:[#allocation2] sm:$0xff]  ;;  %v761_v34 = vld [vmem:[#allocation2 + $0xb] sm:$0x3] }
 0x151   : > { %v664_v52 = vld [vmem:[#allocation2 + $0x1] sm:$0xff]  ;;  %v648_v56 = vmul.f32 0.011108996, %v632_v51  ;;  %v809_v21 = vmul.f32 0.60653067, %v793_v50 }
 0x152   : > { %v697_v15 = vadd.f32 %v681_v49, %v649_v48  ;;  %v712_v53 = vld [vmem:[#allocation2 + $0x2] sm:$0xff]  ;;  %v1506_v54 = vpop.f32.mrb[0].mxu1  ;;  %v680_v57 = vmul.f32 0.13533528, %v664_v52  ;;  %v841_v58 = vld [vmem:[#allocation2 + $0xd] sm:$0x3] }
 0x153   : > { %625 = vst.msk [vmem:[#allocation2 + $0x48] sm:$0xff] %vm615_vm2, %v1506_v54  ;;  %v576_v59 = vpop.f32.mrb[1].mxu1  ;;  %v1497_v35 = vpop.f32.mrb[2].mxu0  ;;  %v889_v61 = vld [vmem:[#allocation2 + $0xe] sm:$0x3]  ;;  %v792_v63 = vld [vmem:[#allocation2 + $0x4] sm:$0xff] }
 0x154   : > { %v745_v55 = vadd.f32 %v729_v29, %v697_v15  ;;  %v696_v22 = vadd.f32 %v680_v57, %v648_v56  ;;  %v728_v62 = vmul.f32 0.60653067, %v712_v53  ;;  %624 = vst.msk [vmem:[#allocation2 + $0x40] sm:$0xff] %vm615_vm2, %v576_v59  ;;  %619 = vst.msk [vmem:[#allocation2 + $0x18] sm:$0xff] %vm615_vm2, %v1497_v35  ;;  %v546_v23 = vpop.f32.mrb[3].mxu0  ;;  %v840_v39 = vld [vmem:[#allocation2 + $0x5] sm:$0xff] }
 0x155   : > { %v888_v38 = vld [vmem:[#allocation2 + $0x6] sm:$0xff]  ;;  %618 = vst.msk [vmem:[#allocation2 + $0x10] sm:$0xff] %vm615_vm2, %v546_v23  ;;  %v857_v2 = vmul.f32 0.13533528, %v841_v58  ;;  %v905_v7 = vmul.f32 0.011108996, %v889_v61 }
 0x156   : > { %v777_v60 = vadd.f32 %v761_v34, %v745_v55  ;;  %v1509_v0 = vpop.f32.mrb[2].mxu1  ;;  %v744_v3 = vadd.f32 %v728_v62, %v696_v22  ;;  %v760_v9 = vld [vmem:[#allocation2 + $0x3] sm:$0xff]  ;;  %v808_v10 = vmul.f32 0.60653067, %v792_v63  ;;  %v856_v13 = vmul.f32 0.13533528, %v840_v39 }
 0x157   : > { %627 = vst.msk [vmem:[#allocation2 + $0x58] sm:$0xff] %vm615_vm2, %v1509_v0  ;;  %v586_v5 = vpop.f32.mrb[3].mxu1  ;;  %v1500_v11 = vpop.f32.mrb[4].mxu0  ;;  %v904_v14 = vmul.f32 0.011108996, %v888_v38 }
 0x158   : > { %v825_v1 = vadd.f32 %v809_v21, %v777_v60  ;;  %626 = vst.msk [vmem:[#allocation2 + $0x50] sm:$0xff] %vm615_vm2, %v586_v5  ;;  %v776_v12 = vadd.f32 %v760_v9, %v744_v3  ;;  %621 = vst.msk [vmem:[#allocation2 + $0x28] sm:$0xff] %vm615_vm2, %v1500_v11  ;;  %v556_v16 = vpop.f32.mrb[5].mxu0 }
 0x159   : > { %620 = vst.msk [vmem:[#allocation2 + $0x20] sm:$0xff] %vm615_vm2, %v556_v16 }
 0x15a   : > { %v873_v4 = vadd.f32 %v857_v2, %v825_v1  ;;  %v641_v17 = vld [vmem:[#allocation2 + $0x48] sm:$0x3]  ;;  %v721_v19 = vld [vmem:[#allocation2 + $0x4a] sm:$0x3]  ;;  %v824_v24 = vadd.f32 %v808_v10, %v776_v12  ;;  %v801_v31 = vld [vmem:[#allocation2 + $0x4c] sm:$0x3] }
 0x15b   : > { %v673_v18 = vld [vmem:[#allocation2 + $0x49] sm:$0x3]  ;;  %v657_v25 = vmul.f32 0.011108996, %v641_v17  ;;  %v737_v27 = vmul.f32 0.60653067, %v721_v19 }
 0x15c   : > { %v921_v20 = vadd.f32 %v905_v7, %v873_v4  ;;  %v689_v26 = vmul.f32 0.13533528, %v673_v18  ;;  %v769_v30 = vld [vmem:[#allocation2 + $0x4b] sm:$0x3]  ;;  %v849_v32 = vld [vmem:[#allocation2 + $0x4d] sm:$0x3]  ;;  %v872_v33 = vadd.f32 %v856_v13, %v824_v24 }
 0x15d   : > { %v817_v8 = vmul.f32 0.60653067, %v801_v31  ;;  %v865_v37 = vmul.f32 0.13533528, %v849_v32  ;;  %v897_v40 = vld [vmem:[#allocation2 + $0x4e] sm:$0x3] }
 0x15e   : > { %952 = vst.msk [vmem:[#allocation3 + $0x38] sm:$0x3] %vm937_vm1, %v921_v20  ;;  %v705_v36 = vadd.f32 %v689_v26, %v657_v25  ;;  %v913_v41 = vmul.f32 0.011108996, %v897_v40  ;;  %v640_v42 = vld [vmem:[#allocation2 + $0x40] sm:$0xff]  ;;  %v1512_v44 = vpop.f32.mrb[4].mxu1  ;;  %v920_v45 = vadd.f32 %v904_v14, %v872_v33 }
 0x15f   : > { %v672_v28 = vld [vmem:[#allocation2 + $0x41] sm:$0xff]  ;;  %v656_v46 = vmul.f32 0.011108996, %v640_v42  ;;  %629 = vst.msk [vmem:[#allocation2 + $0x68] sm:$0xff] %vm615_vm2, %v1512_v44  ;;  %v635_v55 = vld [vmem:[#allocation2 + $0x18] sm:$0x3] }
 0x160   : > { %v720_v43 = vld [vmem:[#allocation2 + $0x42] sm:$0xff]  ;;  %v753_v6 = vadd.f32 %v737_v27, %v705_v36  ;;  %v688_v47 = vmul.f32 0.13533528, %v672_v28  ;;  %951 = vst.msk [vmem:[#allocation3 + $0x30] sm:$0xff] %vm615_vm2, %v920_v45  ;;  %v651_v34 = vmul.f32 0.011108996, %v635_v55 }
 0x161   : > { %v800_v48 = vld [vmem:[#allocation2 + $0x44] sm:$0xff]  ;;  %v736_v49 = vmul.f32 0.60653067, %v720_v43  ;;  %v667_v56 = vld [vmem:[#allocation2 + $0x19] sm:$0x3]  ;;  %v634_v25 = vld [vmem:[#allocation2 + $0x10] sm:$0xff] }
 0x162   : > { %v768_v15 = vld [vmem:[#allocation2 + $0x43] sm:$0xff]  ;;  %v785_v51 = vadd.f32 %v769_v30, %v753_v6  ;;  %v704_v52 = vadd.f32 %v688_v47, %v656_v46  ;;  %v816_v53 = vmul.f32 0.60653067, %v800_v48  ;;  %v715_v57 = vld [vmem:[#allocation2 + $0x1a] sm:$0x3]  ;;  %v666_v26 = vld [vmem:[#allocation2 + $0x11] sm:$0xff] }
 0x163   : > { %v848_v29 = vld [vmem:[#allocation2 + $0x45] sm:$0xff]  ;;  %v683_v35 = vmul.f32 0.13533528, %v667_v56  ;;  %v731_v60 = vmul.f32 0.60653067, %v715_v57  ;;  %v794_v40 = vld [vmem:[#allocation2 + $0x14] sm:$0xff] }
 0x164   : > { %v896_v50 = vld [vmem:[#allocation2 + $0x46] sm:$0xff]  ;;  %v864_v54 = vmul.f32 0.13533528, %v848_v29  ;;  %v833_v21 = vadd.f32 %v817_v8, %v785_v51  ;;  %v752_v58 = vadd.f32 %v736_v49, %v704_v52  ;;  %v795_v61 = vld [vmem:[#allocation2 + $0x1c] sm:$0x3]  ;;  %v642_v48 = vld [vmem:[#allocation2 + $0x50] sm:$0xff] }
 0x165   : > { %v912_v59 = vmul.f32 0.011108996, %v896_v50  ;;  %v843_v22 = vld [vmem:[#allocation2 + $0x1d] sm:$0x3]  ;;  %v699_v23 = vadd.f32 %v683_v35, %v651_v34  ;;  %v643_v38 = vld [vmem:[#allocation2 + $0x58] sm:$0x3] }
 0x166   : > { %v881_v62 = vadd.f32 %v865_v37, %v833_v21  ;;  %v784_v63 = vadd.f32 %v768_v15, %v752_v58  ;;  %v891_v39 = vld [vmem:[#allocation2 + $0x1e] sm:$0x3]  ;;  %v675_v0 = vld [vmem:[#allocation2 + $0x59] sm:$0x3]  ;;  %v811_v1 = vmul.f32 0.60653067, %v795_v61 }
 0x167   : > { %v859_v2 = vmul.f32 0.13533528, %v843_v22  ;;  %v659_v3 = vmul.f32 0.011108996, %v643_v38  ;;  %v747_v9 = vadd.f32 %v731_v60, %v699_v23  ;;  %v763_v10 = vld [vmem:[#allocation2 + $0x1b] sm:$0x3] }
 0x168   : > { %v929_v5 = vadd.f32 %v913_v41, %v881_v62  ;;  %v832_v7 = vadd.f32 %v816_v53, %v784_v63  ;;  %v691_v11 = vmul.f32 0.13533528, %v675_v0  ;;  %v723_v4 = vld [vmem:[#allocation2 + $0x5a] sm:$0x3]  ;;  %v803_v14 = vld [vmem:[#allocation2 + $0x5c] sm:$0x3] }
 0x169   : > { %v739_v12 = vmul.f32 0.60653067, %v723_v4  ;;  %v771_v13 = vld [vmem:[#allocation2 + $0x5b] sm:$0x3]  ;;  %v851_v16 = vld [vmem:[#allocation2 + $0x5d] sm:$0x3]  ;;  %v779_v18 = vadd.f32 %v763_v10, %v747_v9 }
 0x16a   : > { %960 = vst.msk [vmem:[#allocation3 + $0x78] sm:$0x3] %vm937_vm1, %v929_v5  ;;  %v880_v17 = vadd.f32 %v864_v54, %v832_v7  ;;  %v907_v19 = vmul.f32 0.011108996, %v891_v39  ;;  %v707_v20 = vadd.f32 %v691_v11, %v659_v3  ;;  %v899_v24 = vld [vmem:[#allocation2 + $0x5e] sm:$0x3] }
 0x16b   : > { %v819_v27 = vmul.f32 0.60653067, %v803_v14  ;;  %v867_v30 = vmul.f32 0.13533528, %v851_v16  ;;  %v650_v31 = vmul.f32 0.011108996, %v634_v25  ;;  %v827_v33 = vadd.f32 %v811_v1, %v779_v18 }
 0x16c   : > { %v928_v32 = vadd.f32 %v912_v59, %v880_v17  ;;  %v755_v36 = vadd.f32 %v739_v12, %v707_v20  ;;  %v682_v8 = vmul.f32 0.13533528, %v666_v26  ;;  %v714_v37 = vld [vmem:[#allocation2 + $0x12] sm:$0xff]  ;;  %v596_v41 = vpop.f32.mrb[5].mxu1  ;;  %v915_v42 = vmul.f32 0.011108996, %v899_v24 }
 0x16d   : > { %v730_v28 = vmul.f32 0.60653067, %v714_v37  ;;  %v842_v43 = vld [vmem:[#allocation2 + $0x15] sm:$0xff]  ;;  %628 = vst.msk [vmem:[#allocation2 + $0x60] sm:$0xff] %vm615_vm2, %v596_v41  ;;  %v875_v45 = vadd.f32 %v859_v2, %v827_v33  ;;  %v810_v47 = vmul.f32 0.60653067, %v794_v40 }
 0x16e   : > { %v890_v44 = vld [vmem:[#allocation2 + $0x16] sm:$0xff]  ;;  %959 = vst.msk [vmem:[#allocation3 + $0x70] sm:$0xff] %vm615_vm2, %v928_v32  ;;  %v787_v6 = vadd.f32 %v771_v13, %v755_v36  ;;  %v698_v46 = vadd.f32 %v682_v8, %v650_v31  ;;  %v1503_v29 = vpop.f32.mrb[6].mxu0  ;;  %v858_v50 = vmul.f32 0.13533528, %v842_v43  ;;  %v1515_v21 = vpop.f32.mrb[6].mxu1 }
 0x16f   : > { %v674_v49 = vld [vmem:[#allocation2 + $0x51] sm:$0xff]  ;;  %v658_v51 = vmul.f32 0.011108996, %v642_v48  ;;  %623 = vst.msk [vmem:[#allocation2 + $0x38] sm:$0xff] %vm615_vm2, %v1503_v29  ;;  %v923_v53 = vadd.f32 %v907_v19, %v875_v45  ;;  %v906_v58 = vmul.f32 0.011108996, %v890_v44 }
 0x170   : > { %v722_v15 = vld [vmem:[#allocation2 + $0x52] sm:$0xff]  ;;  %v690_v52 = vmul.f32 0.13533528, %v674_v49  ;;  %v835_v54 = vadd.f32 %v819_v27, %v787_v6  ;;  %v746_v55 = vadd.f32 %v730_v28, %v698_v46  ;;  %631 = vst.msk [vmem:[#allocation2 + $0x78] sm:$0xff] %vm615_vm2, %v1515_v21  ;;  %v637_v23 = vld [vmem:[#allocation2 + $0x28] sm:$0x3] }
 0x171   : > { %v762_v34 = vld [vmem:[#allocation2 + $0x13] sm:$0xff]  ;;  %v738_v56 = vmul.f32 0.60653067, %v722_v15  ;;  %954 = vst.msk [vmem:[#allocation3 + $0x48] sm:$0x3] %vm937_vm1, %v923_v53  ;;  %v636_v24 = vld [vmem:[#allocation2 + $0x20] sm:$0xff] }
 0x172   : > { %v802_v57 = vld [vmem:[#allocation2 + $0x54] sm:$0xff]  ;;  %v706_v59 = vadd.f32 %v690_v52, %v658_v51  ;;  %v883_v22 = vadd.f32 %v867_v30, %v835_v54  ;;  %v778_v62 = vadd.f32 %v762_v34, %v746_v55  ;;  %v669_v39 = vld [vmem:[#allocation2 + $0x29] sm:$0x3]  ;;  %v653_v0 = vmul.f32 0.011108996, %v637_v23  ;;  %v668_v49 = vld [vmem:[#allocation2 + $0x21] sm:$0xff] }
 0x173   : > { %v770_v35 = vld [vmem:[#allocation2 + $0x53] sm:$0xff]  ;;  %v818_v63 = vmul.f32 0.60653067, %v802_v57  ;;  %v685_v1 = vmul.f32 0.13533528, %v669_v39  ;;  %v716_v15 = vld [vmem:[#allocation2 + $0x22] sm:$0xff] }
 0x174   : > { %v850_v60 = vld [vmem:[#allocation2 + $0x55] sm:$0xff]  ;;  %v754_v38 = vadd.f32 %v738_v56, %v706_v59  ;;  %v717_v2 = vld [vmem:[#allocation2 + $0x2a] sm:$0x3]  ;;  %v931_v3 = vadd.f32 %v915_v42, %v883_v22  ;;  %v826_v5 = vadd.f32 %v810_v47, %v778_v62  ;;  %v797_v10 = vld [vmem:[#allocation2 + $0x2c] sm:$0x3]  ;;  %v566_v29 = vpop.f32.mrb[7].mxu0 }
 0x175   : > { %v898_v61 = vld [vmem:[#allocation2 + $0x56] sm:$0xff]  ;;  %v866_v7 = vmul.f32 0.13533528, %v850_v60  ;;  %v701_v4 = vadd.f32 %v685_v1, %v653_v0  ;;  %v733_v12 = vmul.f32 0.60653067, %v717_v2  ;;  %v796_v53 = vld [vmem:[#allocation2 + $0x24] sm:$0xff] }
 0x176   : > { %v914_v9 = vmul.f32 0.011108996, %v898_v61  ;;  %v786_v11 = vadd.f32 %v770_v35, %v754_v38  ;;  %v845_v13 = vld [vmem:[#allocation2 + $0x2d] sm:$0x3]  ;;  %962 = vst.msk [vmem:[#allocation3 + $0x88] sm:$0x3] %vm937_vm1, %v931_v3  ;;  %v874_v16 = vadd.f32 %v858_v50, %v826_v5 }
 0x177   : > { %v893_v14 = vld [vmem:[#allocation2 + $0x2e] sm:$0x3]  ;;  %v765_v17 = vld [vmem:[#allocation2 + $0x2b] sm:$0x3]  ;;  %v813_v18 = vmul.f32 0.60653067, %v797_v10  ;;  %v749_v26 = vadd.f32 %v733_v12, %v701_v4 }
 0x178   : > { %v861_v19 = vmul.f32 0.13533528, %v845_v13  ;;  %v645_v20 = vld [vmem:[#allocation2 + $0x68] sm:$0x3]  ;;  %v834_v25 = vadd.f32 %v818_v63, %v786_v11  ;;  %v725_v31 = vld [vmem:[#allocation2 + $0x6a] sm:$0x3]  ;;  %v922_v32 = vadd.f32 %v906_v58, %v874_v16 }
 0x179   : > { %v661_v27 = vmul.f32 0.011108996, %v645_v20  ;;  %v677_v30 = vld [vmem:[#allocation2 + $0x69] sm:$0x3]  ;;  %v909_v33 = vmul.f32 0.011108996, %v893_v14  ;;  %v781_v40 = vadd.f32 %v765_v17, %v749_v26 }
 0x17a   : > { %v693_v36 = vmul.f32 0.13533528, %v677_v30  ;;  %v741_v8 = vmul.f32 0.60653067, %v725_v31  ;;  %v882_v37 = vadd.f32 %v866_v7, %v834_v25  ;;  %v805_v41 = vld [vmem:[#allocation2 + $0x6c] sm:$0x3] }
 0x17b   : > { %v853_v42 = vld [vmem:[#allocation2 + $0x6d] sm:$0x3]  ;;  %953 = vst.msk [vmem:[#allocation3 + $0x40] sm:$0xff] %vm615_vm2, %v922_v32  ;;  %v773_v44 = vld [vmem:[#allocation2 + $0x6b] sm:$0x3]  ;;  %v829_v47 = vadd.f32 %v813_v18, %v781_v40  ;;  %622 = vst.msk [vmem:[#allocation2 + $0x30] sm:$0xff] %vm615_vm2, %v566_v29 }
 0x17c   : > { %v901_v28 = vld [vmem:[#allocation2 + $0x6e] sm:$0x3]  ;;  %v709_v43 = vadd.f32 %v693_v36, %v661_v27  ;;  %v821_v45 = vmul.f32 0.60653067, %v805_v41  ;;  %v869_v6 = vmul.f32 0.13533528, %v853_v42  ;;  %v930_v46 = vadd.f32 %v914_v9, %v882_v37 }
 0x17d   : > { %v652_v48 = vmul.f32 0.011108996, %v636_v24  ;;  %v917_v51 = vmul.f32 0.011108996, %v901_v28  ;;  %v684_v52 = vmul.f32 0.13533528, %v668_v49  ;;  %v877_v54 = vadd.f32 %v861_v19, %v829_v47 }
 0x17e   : > { %v757_v50 = vadd.f32 %v741_v8, %v709_v43  ;;  %961 = vst.msk [vmem:[#allocation3 + $0x80] sm:$0xff] %vm615_vm2, %v930_v46  ;;  %v732_v55 = vmul.f32 0.60653067, %v716_v15  ;;  %v812_v34 = vmul.f32 0.60653067, %v796_v53  ;;  %v844_v56 = vld [vmem:[#allocation2 + $0x25] sm:$0xff] }
 0x17f   : > { %v644_v57 = vld [vmem:[#allocation2 + $0x60] sm:$0xff]  ;;  %v700_v58 = vadd.f32 %v684_v52, %v652_v48  ;;  %v925_v22 = vadd.f32 %v909_v33, %v877_v54  ;;  %v860_v1 = vmul.f32 0.13533528, %v844_v56  ;;  %v639_v3 = vld [vmem:[#allocation2 + $0x38] sm:$0x3]  ;;  %v606_v54 = vpop.f32.mrb[7].mxu1 }
 0x180   : > { %v789_v21 = vadd.f32 %v773_v44, %v757_v50  ;;  %v892_v59 = vld [vmem:[#allocation2 + $0x26] sm:$0xff]  ;;  %v660_v35 = vmul.f32 0.011108996, %v644_v57  ;;  %v655_v11 = vmul.f32 0.011108996, %v639_v3  ;;  %630 = vst.msk [vmem:[#allocation2 + $0x70] sm:$0xff] %vm615_vm2, %v606_v54 }
 0x181   : > { %v676_v60 = vld [vmem:[#allocation2 + $0x61] sm:$0xff]  ;;  %v748_v38 = vadd.f32 %v732_v55, %v700_v58  ;;  %956 = vst.msk [vmem:[#allocation3 + $0x58] sm:$0x3] %vm937_vm1, %v925_v22  ;;  %v908_v5 = vmul.f32 0.011108996, %v892_v59 }
 0x182   : > { %v724_v61 = vld [vmem:[#allocation2 + $0x62] sm:$0xff]  ;;  %v692_v62 = vmul.f32 0.13533528, %v676_v60  ;;  %v837_v39 = vadd.f32 %v821_v45, %v789_v21  ;;  %v671_v14 = vld [vmem:[#allocation2 + $0x39] sm:$0x3]  ;;  %v638_v52 = vld [vmem:[#allocation2 + $0x30] sm:$0xff] }
 0x183   : > { %v740_v63 = vmul.f32 0.60653067, %v724_v61  ;;  %v804_v23 = vld [vmem:[#allocation2 + $0x64] sm:$0xff]  ;;  %v719_v16 = vld [vmem:[#allocation2 + $0x3a] sm:$0x3]  ;;  %v670_v53 = vld [vmem:[#allocation2 + $0x31] sm:$0xff] }
 0x184   : > { %v764_v0 = vld [vmem:[#allocation2 + $0x23] sm:$0xff]  ;;  %v708_v7 = vadd.f32 %v692_v62, %v660_v35  ;;  %v885_v4 = vadd.f32 %v869_v6, %v837_v39  ;;  %v820_v13 = vmul.f32 0.60653067, %v804_v23  ;;  %v687_v19 = vmul.f32 0.13533528, %v671_v14  ;;  %v718_v56 = vld [vmem:[#allocation2 + $0x32] sm:$0xff] }
 0x185   : > { %v852_v2 = vld [vmem:[#allocation2 + $0x65] sm:$0xff]  ;;  %v780_v12 = vadd.f32 %v764_v0, %v748_v38  ;;  %v799_v20 = vld [vmem:[#allocation2 + $0x3c] sm:$0x3]  ;;  %v735_v27 = vmul.f32 0.60653067, %v719_v16 }
 0x186   : > { %v772_v9 = vld [vmem:[#allocation2 + $0x63] sm:$0xff]  ;;  %v756_v17 = vadd.f32 %v740_v63, %v708_v7  ;;  %v868_v18 = vmul.f32 0.13533528, %v852_v2  ;;  %v933_v24 = vadd.f32 %v917_v51, %v885_v4  ;;  %v703_v31 = vadd.f32 %v687_v19, %v655_v11  ;;  %v847_v33 = vld [vmem:[#allocation2 + $0x3d] sm:$0x3]  ;;  %v969_v11 = vld [vmem:[#allocation3 + $0x10] sm:$0xff] }
 0x187   : > { %v900_v10 = vld [vmem:[#allocation2 + $0x66] sm:$0xff]  ;;  %v828_v25 = vadd.f32 %v812_v34, %v780_v12  ;;  %v815_v32 = vmul.f32 0.60653067, %v799_v20  ;;  %v647_v36 = vld [vmem:[#allocation2 + $0x78] sm:$0x3]  ;;  %v646_v20 = vld [vmem:[#allocation2 + $0x70] sm:$0xff] }
 0x188   : > { %v916_v26 = vmul.f32 0.011108996, %v900_v10  ;;  %v788_v30 = vadd.f32 %v772_v9, %v756_v17  ;;  %964 = vst.msk [vmem:[#allocation3 + $0x98] sm:$0x3] %vm937_vm1, %v933_v24  ;;  %v767_v37 = vld [vmem:[#allocation2 + $0x3b] sm:$0x3]  ;;  %v751_v43 = vadd.f32 %v735_v27, %v703_v31 }
 0x189   : > { %v876_v8 = vadd.f32 %v860_v1, %v828_v25  ;;  %v663_v40 = vmul.f32 0.011108996, %v647_v36  ;;  %v679_v41 = vld [vmem:[#allocation2 + $0x79] sm:$0x3]  ;;  %v895_v44 = vld [vmem:[#allocation2 + $0x3e] sm:$0x3] }
 0x18a   : > { %v727_v42 = vld [vmem:[#allocation2 + $0x7a] sm:$0x3]  ;;  %v836_v28 = vadd.f32 %v820_v13, %v788_v30  ;;  %v695_v45 = vmul.f32 0.13533528, %v679_v41  ;;  %v863_v47 = vmul.f32 0.13533528, %v847_v33  ;;  %v783_v29 = vadd.f32 %v767_v37, %v751_v43 }
 0x18b   : > { %v743_v6 = vmul.f32 0.60653067, %v727_v42  ;;  %v924_v46 = vadd.f32 %v908_v5, %v876_v8  ;;  %v775_v48 = vld [vmem:[#allocation2 + $0x7b] sm:$0x3]  ;;  %v855_v51 = vld [vmem:[#allocation2 + $0x7d] sm:$0x3] }
 0x18c   : > { %v807_v49 = vld [vmem:[#allocation2 + $0x7c] sm:$0x3]  ;;  %v884_v15 = vadd.f32 %v868_v18, %v836_v28  ;;  %v711_v50 = vadd.f32 %v695_v45, %v663_v40  ;;  %v654_v34 = vmul.f32 0.011108996, %v638_v52  ;;  %v831_v21 = vadd.f32 %v815_v32, %v783_v29  ;;  %v968_v35 = vld [vmem:[#allocation3 + $0x8] sm:$0x3] }
 0x18d   : > { %955 = vst.msk [vmem:[#allocation3 + $0x50] sm:$0xff] %vm615_vm2, %v924_v46  ;;  %v823_v55 = vmul.f32 0.60653067, %v807_v49  ;;  %v686_v59 = vmul.f32 0.13533528, %v670_v53  ;;  %v967_v0 = vld [vmem:[#allocation3] sm:$0xff] }
 0x18e   : > { %v932_v57 = vadd.f32 %v916_v26, %v884_v15  ;;  %v759_v58 = vadd.f32 %v743_v6, %v711_v50  ;;  %v1001_v60 = vld [vmem:[#allocation3 + $0x18] sm:$0x3]  ;;  %v911_v61 = vmul.f32 0.011108996, %v895_v44  ;;  %v871_v22 = vmul.f32 0.13533528, %v855_v51 }
 0x18f   : > { %v903_v62 = vld [vmem:[#allocation2 + $0x7e] sm:$0x3]  ;;  %v879_v63 = vadd.f32 %v863_v47, %v831_v21  ;;  %v702_v39 = vadd.f32 %v686_v59, %v654_v34  ;;  %v734_v38 = vmul.f32 0.60653067, %v718_v56  ;;  %v798_v1 = vld [vmem:[#allocation2 + $0x34] sm:$0xff]  ;;  %v971_v40 = vld [vmem:[#allocation3 + $0x20] sm:$0xff] }
 0x190   : > { %963 = vst.msk [vmem:[#allocation3 + $0x90] sm:$0xff] %vm615_vm2, %v932_v57  ;;  %v791_v23 = vadd.f32 %v775_v48, %v759_v58  ;;  %v2136_v2 = vmul.f32 0.011108996, %v968_v35  ;;  %v2138_v3 = vmul.f32 0.13533528, %v1001_v60  ;;  %v766_v4 = vld [vmem:[#allocation2 + $0x33] sm:$0xff] }
 0x191   : > { %v927_v5 = vadd.f32 %v911_v61, %v879_v63  ;;  %v919_v9 = vmul.f32 0.011108996, %v903_v62  ;;  %v750_v10 = vadd.f32 %v734_v38, %v702_v39  ;;  %v846_v12 = vld [vmem:[#allocation2 + $0x35] sm:$0xff]  ;;  %v2140_v16 = vmul.f32 0.011108996, %v967_v0  ;;  %v2161_v39 = vld [vmem:[#allocation3 + $0x40] sm:$0xff] }
 0x192   : > { %v839_v7 = vadd.f32 %v823_v55, %v791_v23  ;;  %v894_v13 = vld [vmem:[#allocation2 + $0x36] sm:$0xff]  ;;  %v814_v19 = vmul.f32 0.60653067, %v798_v1  ;;  %v662_v26 = vmul.f32 0.011108996, %v646_v20 }
 0x193   : > { %v970_v14 = vld [vmem:[#allocation3 + $0x18] sm:$0x3]  ;;  %958 = vst.msk [vmem:[#allocation3 + $0x68] sm:$0x3] %vm937_vm1, %v927_v5  ;;  %v782_v18 = vadd.f32 %v766_v4, %v750_v10  ;;  %v862_v33 = vmul.f32 0.13533528, %v846_v12 }
 0x194   : > { %v887_v17 = vadd.f32 %v871_v22, %v839_v7  ;;  %v678_v24 = vld [vmem:[#allocation2 + $0x71] sm:$0xff]  ;;  %v1003_v8 = vld [vmem:[#allocation3 + $0x28] sm:$0x3]  ;;  %v1016_v41 = vmul.f32 0.13533528, %v969_v11 }
 0x195   : > { %v726_v25 = vld [vmem:[#allocation2 + $0x72] sm:$0xff]  ;;  %v694_v27 = vmul.f32 0.13533528, %v678_v24  ;;  %v830_v32 = vadd.f32 %v814_v19, %v782_v18  ;;  %v1050_v42 = vld [vmem:[#allocation3 + $0x28] sm:$0x3] }
 0x196   : > { %v742_v30 = vmul.f32 0.60653067, %v726_v25  ;;  %v935_v31 = vadd.f32 %v919_v9, %v887_v17  ;;  %v806_v36 = vld [vmem:[#allocation2 + $0x74] sm:$0xff]  ;;  %v910_v43 = vmul.f32 0.011108996, %v894_v13  ;;  %v1032_v20 = vadd.f32 %v1016_v41, %v2140_v16 }
 0x197   : > { %v710_v37 = vadd.f32 %v694_v27, %v662_v26  ;;  %v878_v28 = vadd.f32 %v862_v33, %v830_v32  ;;  %v774_v44 = vld [vmem:[#allocation2 + $0x73] sm:$0xff]  ;;  %v2144_v6 = vmul.f32 0.011108996, %v970_v14  ;;  %v822_v47 = vmul.f32 0.60653067, %v806_v36  ;;  %v2179_v33 = vld [vmem:[#allocation3 + $0x80] sm:$0xff] }
 0x198   : > { %966 = vst.msk [vmem:[#allocation3 + $0xa8] sm:$0x3] %vm937_vm1, %v935_v31  ;;  %v854_v45 = vld [vmem:[#allocation2 + $0x75] sm:$0xff]  ;;  %v972_v48 = vld [vmem:[#allocation3 + $0x28] sm:$0x3] }
 0x199   : > { %v758_v46 = vadd.f32 %v742_v30, %v710_v37  ;;  %v2146_v49 = vmul.f32 0.13533528, %v1003_v8  ;;  %v926_v15 = vadd.f32 %v910_v43, %v878_v28  ;;  %v902_v29 = vld [vmem:[#allocation2 + $0x76] sm:$0xff]  ;;  %v2148_v50 = vmul.f32 0.011108996, %v969_v11 }
 0x19a   : > { %v2150_v51 = vmul.f32 0.60653067, %v1050_v42  ;;  %v1144_v52 = vld [vmem:[#allocation3 + $0xb0] sm:$0xff]  ;;  %v870_v54 = vmul.f32 0.13533528, %v854_v45  ;;  %v1033_v8 = vadd.f32 %v2138_v3, %v2136_v2 }
 0x19b   : > { %v790_v53 = vadd.f32 %v774_v44, %v758_v46  ;;  %v1018_v55 = vmul.f32 0.13533528, %v971_v40  ;;  %v1145_v34 = vld [vmem:[#allocation3 + $0xb8] sm:$0x3]  ;;  %957 = vst.msk [vmem:[#allocation3 + $0x60] sm:$0xff] %vm615_vm2, %v926_v15  ;;  %v2155_v61 = vld [vmem:[#allocation3 + $0x30] sm:$0xff]  ;;  %v1035_v3 = vadd.f32 %v2146_v49, %v2144_v6 }
 0x19c   : > { %v987_v56 = vmul.f32 0.011108996, %v971_v40  ;;  %v988_v57 = vmul.f32 0.011108996, %v972_v48  ;;  %v1065_v21 = vmul.f32 0.60653067, %v971_v40 }
 0x19d   : > { %v838_v58 = vadd.f32 %v822_v47, %v790_v53  ;;  %v918_v59 = vmul.f32 0.011108996, %v902_v29  ;;  %v2153_v35 = vmul.f32 0.60653067, %v1144_v52  ;;  %v1192_v60 = vld [vmem:[#allocation3 + $0xb8] sm:$0x3]  ;;  %v1034_v29 = vadd.f32 %v1018_v55, %v2148_v50 }
 0x19e   : > { %v2157_v22 = vmul.f32 0.60653067, %v1145_v34  ;;  %v2159_v62 = vmul.f32 0.13533528, %v1144_v52  ;;  %v974_v23 = vld [vmem:[#allocation3 + $0x38] sm:$0x3]  ;;  %v1081_v28 = vadd.f32 %v1065_v21, %v1032_v20 }
 0x19f   : > { %v886_v63 = vadd.f32 %v870_v54, %v838_v58  ;;  %v976_v38 = vld [vmem:[#allocation3 + $0x48] sm:$0x3]  ;;  %v2163_v0 = vld [vmem:[#allocation3 + $0x50] sm:$0xff]  ;;  %v978_v1 = vld [vmem:[#allocation3 + $0x58] sm:$0x3]  ;;  %v1082_v54 = vadd.f32 %v2150_v51, %v1033_v8 }
 0x1a0   : > { %v2165_v5 = vld [vmem:[#allocation3 + $0x70] sm:$0xff]  ;;  %v2167_v7 = vmul.f32 0.13533528, %v1192_v60  ;;  %v982_v10 = vld [vmem:[#allocation3 + $0x78] sm:$0x3]  ;;  %v2201_v34 = vadd.f32 %v1081_v28, %v2155_v61 }
 0x1a1   : > { %v934_v9 = vadd.f32 %v918_v59, %v886_v63  ;;  %v989_v11 = vmul.f32 0.011108996, %v2155_v61  ;;  %v2170_v4 = vmul.f32 0.011108996, %v1144_v52  ;;  %v990_v12 = vmul.f32 0.011108996, %v974_v23 }
 0x1a2   : > { %v991_v13 = vmul.f32 0.011108996, %v2161_v39  ;;  %v992_v14 = vmul.f32 0.011108996, %v976_v38  ;;  %v993_v17 = vmul.f32 0.011108996, %v2163_v0 }
 0x1a3   : > { %965 = vst.msk [vmem:[#allocation3 + $0xa0] sm:$0xff] %vm615_vm2, %v934_v9  ;;  %v994_v18 = vmul.f32 0.011108996, %v978_v1  ;;  %v2176_v19 = vmul.f32 0.011108996, %v2165_v5  ;;  %v2191_v47 = vld [vmem:[#allocation3 + $0x60] sm:$0xff] }
 0x1a4   : > { %v980_v24 = vld [vmem:[#allocation3 + $0x68] sm:$0x3]  ;;  %v998_v25 = vmul.f32 0.011108996, %v982_v10  ;;  %v1005_v26 = vld [vmem:[#allocation3 + $0x38] sm:$0x3] }
 0x1a5   : > { %v1007_v27 = vld [vmem:[#allocation3 + $0x48] sm:$0x3]  ;;  %v1009_v30 = vld [vmem:[#allocation3 + $0x58] sm:$0x3]  ;;  %v996_v37 = vmul.f32 0.011108996, %v980_v24 }
 0x1a6   : > { %v1013_v31 = vld [vmem:[#allocation3 + $0x78] sm:$0x3]  ;;  %v1011_v32 = vld [vmem:[#allocation3 + $0x68] sm:$0x3]  ;;  %v1020_v40 = vmul.f32 0.13533528, %v2155_v61 }
 0x1a7   : > { %v1015_v36 = vld [vmem:[#allocation3 + $0x88] sm:$0x3]  ;;  %v1021_v42 = vmul.f32 0.13533528, %v1005_v26  ;;  %v1022_v16 = vmul.f32 0.13533528, %v2161_v39 }
 0x1a8   : > { %v1023_v41 = vmul.f32 0.13533528, %v1007_v27  ;;  %v2186_v43 = vmul.f32 0.13533528, %v2163_v0  ;;  %v1025_v44 = vmul.f32 0.13533528, %v1009_v30  ;;  %v1036_v21 = vadd.f32 %v1020_v40, %v987_v56 }
 0x1a9   : > { %v1027_v45 = vmul.f32 0.13533528, %v1011_v32  ;;  %v2189_v46 = vmul.f32 0.13533528, %v2165_v5  ;;  %v1029_v48 = vmul.f32 0.13533528, %v1013_v31  ;;  %v1037_v58 = vadd.f32 %v1021_v42, %v988_v57 }
 0x1aa   : > { %v2194_v2 = vmul.f32 0.13533528, %v2179_v33  ;;  %v1031_v15 = vmul.f32 0.13533528, %v1015_v36  ;;  %v1052_v52 = vld [vmem:[#allocation3 + $0x38] sm:$0x3]  ;;  %v1038_v59 = vadd.f32 %v1022_v16, %v989_v11  ;;  %v1039_v60 = vadd.f32 %v1023_v41, %v990_v12 }
 0x1ab   : > { %v1054_v53 = vld [vmem:[#allocation3 + $0x48] sm:$0x3]  ;;  %v1056_v63 = vld [vmem:[#allocation3 + $0x58] sm:$0x3]  ;;  %v2204_v1 = vmul.f32 0.13533528, %v2191_v47  ;;  %v1040_v6 = vadd.f32 %v2186_v43, %v991_v13  ;;  %v1041_v49 = vadd.f32 %v1025_v44, %v992_v14  ;;  %v1043_v56 = vadd.f32 %v1027_v45, %v994_v18 }
 0x1ac   : > { %v1058_v23 = vld [vmem:[#allocation3 + $0x68] sm:$0x3]  ;;  %v1060_v38 = vld [vmem:[#allocation3 + $0x78] sm:$0x3]  ;;  %v2207_v50 = vld [vmem:[#allocation3 + $0x90] sm:$0xff]  ;;  %v1045_v57 = vadd.f32 %v1029_v48, %v996_v37  ;;  %v1046_v12 = vadd.f32 %v2194_v2, %v2176_v19  ;;  %v1047_v14 = vadd.f32 %v1031_v15, %v998_v25 }
 0x1ad   : > { %v1067_v51 = vmul.f32 0.60653067, %v2155_v61  ;;  %v2211_v55 = vmul.f32 0.011108996, %v2191_v47  ;;  %v1062_v9 = vld [vmem:[#allocation3 + $0x88] sm:$0x3]  ;;  %v1042_v30 = vadd.f32 %v2204_v1, %v993_v17 }
 0x1ae   : > { %v1064_v10 = vld [vmem:[#allocation3 + $0x98] sm:$0x3]  ;;  %v1068_v11 = vmul.f32 0.60653067, %v1052_v52  ;;  %v1069_v20 = vmul.f32 0.60653067, %v2161_v39 }
 0x1af   : > { %v1070_v24 = vmul.f32 0.60653067, %v1054_v53  ;;  %v1071_v13 = vmul.f32 0.60653067, %v2163_v0  ;;  %v1072_v26 = vmul.f32 0.60653067, %v1056_v63  ;;  %v1083_v32 = vadd.f32 %v1067_v51, %v1034_v29 }
 0x1b0   : > { %v1073_v61 = vmul.f32 0.60653067, %v2191_v47  ;;  %v1074_v27 = vmul.f32 0.60653067, %v1058_v23  ;;  %v2220_v18 = vmul.f32 0.60653067, %v2165_v5  ;;  %v1044_v36 = vadd.f32 %v2189_v46, %v2211_v55 }
 0x1b1   : > { %v1076_v31 = vmul.f32 0.60653067, %v1060_v38  ;;  %v2225_v8 = vmul.f32 0.60653067, %v2207_v50  ;;  %v1080_v37 = vmul.f32 0.60653067, %v1064_v10  ;;  %v1084_v40 = vadd.f32 %v1068_v11, %v1035_v3 }
 0x1b2   : > { %v1131_v25 = vld [vmem:[#allocation3 + $0x48] sm:$0x3]  ;;  %v2228_v42 = vmul.f32 0.60653067, %v2179_v33  ;;  %v1078_v28 = vmul.f32 0.60653067, %v1062_v9  ;;  %v1085_v16 = vadd.f32 %v1069_v20, %v1036_v21  ;;  %v1086_v17 = vadd.f32 %v1070_v24, %v1037_v58 }
 0x1b3   : > { %v1087_v41 = vadd.f32 %v1071_v13, %v1038_v59  ;;  %v1088_v44 = vadd.f32 %v1072_v26, %v1039_v60  ;;  %v1089_v45 = vadd.f32 %v1073_v61, %v1040_v6  ;;  %v1090_v48 = vadd.f32 %v1074_v27, %v1041_v49  ;;  %v1098_v15 = vld [vmem:[#allocation3 + $0x38] sm:$0x3]  ;;  %v1100_v23 = vld [vmem:[#allocation3 + $0x48] sm:$0x3] }
 0x1b4   : > { %v1133_v29 = vld [vmem:[#allocation3 + $0x58] sm:$0x3]  ;;  %v1091_v53 = vadd.f32 %v2220_v18, %v1042_v30  ;;  %v1092_v63 = vadd.f32 %v1076_v31, %v1043_v56  ;;  %v1115_v3 = vadd.f32 %v1083_v32, %v2161_v39  ;;  %v1135_v38 = vld [vmem:[#allocation3 + $0x68] sm:$0x3]  ;;  %v1147_v51 = vmul.f32 0.60653067, %v1131_v25 }
 0x1b5   : > { %v1180_v52 = vld [vmem:[#allocation3 + $0x58] sm:$0x3]  ;;  %v1093_v10 = vadd.f32 %v2228_v42, %v1044_v36  ;;  %v1094_v9 = vadd.f32 %v1078_v28, %v1045_v57  ;;  %v1095_v21 = vadd.f32 %v2225_v8, %v1046_v12  ;;  %v2234_v58 = vadd.f32 %v1080_v37, %v1047_v14  ;;  %v1104_v60 = vld [vmem:[#allocation3 + $0x68] sm:$0x3] }
 0x1b6   : > { %v1102_v59 = vld [vmem:[#allocation3 + $0x58] sm:$0x3]  ;;  %v1182_v6 = vld [vmem:[#allocation3 + $0x68] sm:$0x3]  ;;  %v1114_v49 = vadd.f32 %v1098_v15, %v1082_v54  ;;  %v1149_v11 = vmul.f32 0.60653067, %v1133_v29  ;;  %v1164_v24 = vadd.f32 %v1115_v3, %v1071_v13  ;;  %v1116_v27 = vadd.f32 %v1100_v23, %v1084_v40 }
 0x1b7   : > { %v1196_v26 = vmul.f32 0.13533528, %v1180_v52  ;;  %v1229_v56 = vld [vmem:[#allocation3 + $0x68] sm:$0x3]  ;;  %v1117_v39 = vadd.f32 %v1085_v16, %v2163_v0  ;;  %v1151_v30 = vmul.f32 0.60653067, %v1135_v38  ;;  %v1162_v31 = vadd.f32 %v2201_v34, %v1069_v20 }
 0x1b8   : > { %v1118_v32 = vadd.f32 %v1102_v59, %v1086_v17  ;;  %v1163_v57 = vadd.f32 %v1147_v51, %v1114_v49  ;;  %v1198_v36 = vmul.f32 0.13533528, %v1182_v6  ;;  %v1213_v12 = vadd.f32 %v1164_v24, %v2204_v1  ;;  %v1106_v13 = vld [vmem:[#allocation3 + $0x78] sm:$0x3]  ;;  %v1108_v34 = vld [vmem:[#allocation3 + $0x88] sm:$0x3] }
 0x1b9   : > { %v1119_v14 = vadd.f32 %v1087_v41, %v2191_v47  ;;  %v1120_v37 = vadd.f32 %v1104_v60, %v1088_v44  ;;  %v1211_v54 = vadd.f32 %v1162_v31, %v2186_v43  ;;  %v1245_v25 = vmul.f32 0.011108996, %v1229_v56  ;;  %v1137_v40 = vld [vmem:[#allocation3 + $0x78] sm:$0x3]  ;;  %v2242_v20 = vld [vmem:[#allocation3 + $0xa0] sm:$0xff] }
 0x1ba   : > { %v1121_v28 = vadd.f32 %v1089_v45, %v2165_v5  ;;  %v1165_v15 = vadd.f32 %v1149_v11, %v1116_v27  ;;  %v1166_v0 = vadd.f32 %v1117_v39, %v1073_v61  ;;  %v1184_v16 = vld [vmem:[#allocation3 + $0x78] sm:$0x3]  ;;  %v1212_v29 = vadd.f32 %v1196_v26, %v1163_v57  ;;  %v1139_v23 = vld [vmem:[#allocation3 + $0x88] sm:$0x3] }
 0x1bb   : > { %v1122_v17 = vadd.f32 %v1106_v13, %v1090_v48  ;;  %v1123_v1 = vadd.f32 %v1091_v53, %v2179_v33  ;;  %v1167_v52 = vadd.f32 %v1151_v30, %v1118_v32  ;;  %v1231_v47 = vld [vmem:[#allocation3 + $0x78] sm:$0x3]  ;;  %v1260_v41 = vadd.f32 %v1211_v54, %v2211_v55  ;;  %v1186_v55 = vld [vmem:[#allocation3 + $0x88] sm:$0x3] }
 0x1bc   : > { %v1110_v43 = vld [vmem:[#allocation3 + $0x98] sm:$0x3]  ;;  %v1124_v44 = vadd.f32 %v1108_v34, %v1092_v63  ;;  %v1214_v3 = vadd.f32 %v1198_v36, %v1165_v15  ;;  %v1261_v5 = vadd.f32 %v1245_v25, %v1212_v29  ;;  %v1262_v45 = vadd.f32 %v1213_v12, %v2176_v19  ;;  %v1233_v19 = vld [vmem:[#allocation3 + $0x88] sm:$0x3] }
 0x1bd   : > { %v1125_v61 = vadd.f32 %v1093_v10, %v2207_v50  ;;  %v2248_v38 = vadd.f32 %v1110_v43, %v1094_v9  ;;  %v1153_v51 = vmul.f32 0.60653067, %v1137_v40  ;;  %v1200_v59 = vmul.f32 0.13533528, %v1184_v16  ;;  %v1141_v53 = vld [vmem:[#allocation3 + $0x98] sm:$0x3] }
 0x1be   : > { %v2251_v48 = vadd.f32 %v2242_v20, %v1095_v21  ;;  %v1168_v60 = vadd.f32 %v1119_v14, %v2220_v18  ;;  %v1215_v63 = vadd.f32 %v1166_v0, %v2189_v46  ;;  %v1247_v6 = vmul.f32 0.011108996, %v1231_v47  ;;  %v1143_v10 = vld [vmem:[#allocation3 + $0xa8] sm:$0x3]  ;;  %v1188_v46 = vld [vmem:[#allocation3 + $0x98] sm:$0x3] }
 0x1bf   : > { %v1155_v49 = vmul.f32 0.60653067, %v1139_v23  ;;  %v1169_v11 = vadd.f32 %v1153_v51, %v1120_v37  ;;  %v1216_v24 = vadd.f32 %v1200_v59, %v1167_v52  ;;  %v1276_v26 = vmul.f32 %v1260_v41, %v1260_v41  ;;  %v1235_v36 = vld [vmem:[#allocation3 + $0x98] sm:$0x3]  ;;  %v1190_v29 = vld [vmem:[#allocation3 + $0xa8] sm:$0x3] }
 0x1c0   : > { %v1248_v9 = vmul.f32 0.011108996, %v2179_v33  ;;  %v1263_v56 = vadd.f32 %v1247_v6, %v1214_v3  ;;  %v1277_v27 = vmul.f32 %v1261_v5, %v1261_v5  ;;  %v1278_v39 = vmul.f32 %v1262_v45, %v1262_v45  ;;  %v1237_v23 = vld [vmem:[#allocation3 + $0xa8] sm:$0x3]  ;;  %v1239_v3 = vld [vmem:[#allocation3 + $0xb8] sm:$0x3] }
 0x1c1   : > { %v1157_v21 = vmul.f32 0.60653067, %v1141_v53  ;;  %v1158_v30 = vmul.f32 0.60653067, %v2242_v20  ;;  %v1170_v18 = vadd.f32 %v1121_v28, %v2228_v42  ;;  %v1202_v31 = vmul.f32 0.13533528, %v1186_v55 }
 0x1c2   : > { %v1171_v32 = vadd.f32 %v1155_v49, %v1122_v17  ;;  %v1217_v57 = vadd.f32 %v1168_v60, %v2194_v2  ;;  %v1249_v12 = vmul.f32 0.011108996, %v1233_v19  ;;  %v1264_v14 = vadd.f32 %v1248_v9, %v1215_v63  ;;  %v1112_v45 = vld [vmem:[#allocation3 + $0xa8] sm:$0x3]  ;;  %v1193_v6 = vld [vmem:[#allocation3 + $0xc0] sm:$0xff] }
 0x1c3   : > { %v1203_v37 = vmul.f32 0.13533528, %v2207_v50  ;;  %v1218_v54 = vadd.f32 %v1202_v31, %v1169_v11  ;;  %v1250_v33 = vmul.f32 0.011108996, %v2207_v50  ;;  %v1292_v25 = vsel %vm615_vm2, %v1276_v26, 0.0 }
 0x1c4   : > { %v1265_v13 = vadd.f32 %v1249_v12, %v1216_v24  ;;  %v1279_v40 = vmul.f32 %v1263_v56, %v1263_v56  ;;  %v1293_v15 = vsel %vm937_vm1, %v1277_v27, 0.0  ;;  %v1295_v42 = vsel %vm615_vm2, %v1278_v39, 0.0  ;;  %v1194_v9 = vld [vmem:[#allocation3 + $0xc8] sm:$0x3] }
 0x1c5   : > { %v1159_v28 = vmul.f32 0.60653067, %v1143_v10  ;;  %v1172_v0 = vadd.f32 %v1123_v1, %v2225_v8  ;;  %v1204_v2 = vmul.f32 0.13533528, %v1188_v46  ;;  %v1294_v16 = vadd.f32 %v1293_v15, %v1292_v25  ;;  %v1241_v27 = vld [vmem:[#allocation3 + $0xc8] sm:$0x3] }
 0x1c6   : > { %v1219_v34 = vadd.f32 %v1203_v37, %v1170_v18  ;;  %v1251_v17 = vmul.f32 0.011108996, %v1235_v36  ;;  %v1266_v52 = vadd.f32 %v1250_v33, %v1217_v57  ;;  %v1280_v47 = vmul.f32 %v1264_v14, %v1264_v14  ;;  %v1243_v25 = vld [vmem:[#allocation3 + $0xd8] sm:$0x3] }
 0x1c7   : > { %v1173_v41 = vadd.f32 %v1157_v21, %v1124_v44  ;;  %v1205_v50 = vmul.f32 0.13533528, %v2242_v20  ;;  %v1220_v43 = vadd.f32 %v1204_v2, %v1171_v32  ;;  %v1296_v5 = vadd.f32 %v1295_v42, %v1294_v16 }
 0x1c8   : > { %v1252_v51 = vmul.f32 0.011108996, %v2242_v20  ;;  %v1267_v59 = vadd.f32 %v1251_v17, %v1218_v54  ;;  %v1281_v53 = vmul.f32 %v1265_v13, %v1265_v13  ;;  %v1297_v8 = vsel %vm937_vm1, %v1279_v40, 0.0 }
 0x1c9   : > { %v1174_v1 = vadd.f32 %v1158_v30, %v1125_v61  ;;  %v1206_v60 = vmul.f32 0.13533528, %v1190_v29  ;;  %v1221_v55 = vadd.f32 %v1205_v50, %v1172_v0  ;;  %v1298_v63 = vadd.f32 %v1297_v8, %v1296_v5 }
 0x1ca   : > { %v1253_v49 = vmul.f32 0.011108996, %v1237_v23  ;;  %v1268_v44 = vadd.f32 %v1252_v51, %v1219_v34  ;;  %v1282_v11 = vmul.f32 %v1266_v52, %v1266_v52  ;;  %v1299_v24 = vsel %vm615_vm2, %v1280_v47, 0.0 }
 0x1cb   : > { %v1128_v19 = vadd.f32 %v1112_v45, %v2234_v58  ;;  %v1175_v26 = vadd.f32 %v1159_v28, %v2248_v38  ;;  %v1255_v10 = vmul.f32 0.011108996, %v1239_v3  ;;  %v1300_v20 = vadd.f32 %v1299_v24, %v1298_v63  ;;  %v1242_v58 = vld [vmem:[#allocation3 + $0xd0] sm:$0xff] }
 0x1cc   : > { %v1222_v56 = vadd.f32 %v1206_v60, %v1173_v41  ;;  %v1269_v39 = vadd.f32 %v1253_v49, %v1220_v43  ;;  %v1283_v61 = vmul.f32 %v1267_v59, %v1267_v59  ;;  %v1301_v21 = vsel %vm937_vm1, %v1281_v53, 0.0  ;;  %v356_v60 = vpop.xlane.xlu0 %355 }
 0x1cd   : > { %v1176_v30 = vadd.f32 %v2153_v35, %v2251_v48  ;;  %v1209_v18 = vmul.f32 0.13533528, %v1193_v6  ;;  %v1256_v31 = vmul.f32 0.011108996, %v1193_v6  ;;  %v1302_v32 = vadd.f32 %v1301_v21, %v1300_v20 }
 0x1ce   : > { %v1223_v46 = vadd.f32 %v2159_v62, %v1174_v1  ;;  %v1270_v38 = vadd.f32 %v2170_v4, %v1221_v55  ;;  %v1284_v57 = vmul.f32 %v1268_v44, %v1268_v44  ;;  %v1303_v36 = vsel %vm615_vm2, %v1282_v11, 0.0 }
 0x1cf   : > { %v1177_v12 = vadd.f32 %v2157_v22, %v1128_v19  ;;  %v1210_v14 = vmul.f32 0.13533528, %v1194_v9  ;;  %v1257_v37 = vmul.f32 0.011108996, %v1241_v27  ;;  %v1304_v54 = vadd.f32 %v1303_v36, %v1302_v32 }
 0x1d0   : > { %v1224_v33 = vadd.f32 %v2167_v7, %v1175_v26  ;;  %v1271_v35 = vadd.f32 %v1255_v10, %v1222_v56  ;;  %v1285_v48 = vmul.f32 %v1269_v39, %v1269_v39  ;;  %v1305_v13 = vsel %vm937_vm1, %v1283_v61, 0.0  ;;  %v412_v49 = vpop.xlane.xlu0 %411 }
 0x1d1   : > { %v1258_v40 = vmul.f32 0.011108996, %v1242_v58  ;;  %v1306_v62 = vadd.f32 %v1305_v13, %v1304_v54  ;;  %v1225_v15 = vadd.f32 %v1209_v18, %v1176_v30  ;;  %v1272_v42 = vadd.f32 %v1256_v31, %v1223_v46 }
 0x1d2   : > { %v1286_v4 = vmul.f32 %v1270_v38, %v1270_v38  ;;  %v1307_v28 = vsel %vm615_vm2, %v1284_v57, 0.0  ;;  %v1259_v0 = vmul.f32 0.011108996, %v1243_v25  ;;  %v1226_v22 = vadd.f32 %v1210_v14, %v1177_v12 }
 0x1d3   : > { %v1308_v2 = vadd.f32 %v1307_v28, %v1306_v62  ;;  %v1273_v16 = vadd.f32 %v1257_v37, %v1224_v33  ;;  %v1287_v29 = vmul.f32 %v1271_v35, %v1271_v35  ;;  %v1309_v34 = vsel %vm937_vm1, %v1285_v48, 0.0 }
 0x1d4   : > { %v1274_v17 = vadd.f32 %v1258_v40, %v1225_v15  ;;  %v1288_v52 = vmul.f32 %v1272_v42, %v1272_v42  ;;  %v1311_v47 = vsel %vm615_vm2, %v1286_v4, 0.0  ;;  %v1275_v50 = vadd.f32 %v1259_v0, %v1226_v22 }
 0x1d5   : > { %v1310_v7 = vadd.f32 %v1309_v34, %v1308_v2  ;;  %v1289_v43 = vmul.f32 %v1273_v16, %v1273_v16  ;;  %v1313_v23 = vsel %vm937_vm1, %v1287_v29, 0.0  ;;  %v357_v44 = vrot.slane %v356_v60, 4 }
 0x1d6   : > { %v1290_v5 = vmul.f32 %v1274_v17, %v1274_v17  ;;  %v1315_v45 = vsel %vm615_vm2, %v1288_v52, 0.0  ;;  %v1291_v59 = vmul.f32 %v1275_v50, %v1275_v50  ;;  %v413_v11 = vrot.slane %v412_v49, 4 }
 0x1d7   : > { %v1312_v41 = vadd.f32 %v1311_v47, %v1310_v7  ;;  %v1317_v53 = vsel %vm937_vm1, %v1289_v43, 0.0  ;;  %v358_v24 = vadd.f32 %v357_v44, %v356_v60 }
 0x1d8   : > { %v1319_v1 = vsel %vm615_vm2, %v1290_v5, 0.0  ;;  %v1321_v63 = vsel %vm937_vm1, %v1291_v59, 0.0  ;;  %v414_v19 = vadd.f32 %v413_v11, %v412_v49 }
 0x1d9   : > { %v1314_v3 = vadd.f32 %v1313_v23, %v1312_v41  ;;  %v359_v26 = vrot.slane %v358_v24, 2 }
 0x1da   : > { %v415_v10 = vrot.slane %v414_v19, 2 }
 0x1db   : > { %v1316_v51 = vadd.f32 %v1315_v45, %v1314_v3  ;;  %v360_v20 = vadd.f32 %v359_v26, %v358_v24 }
 0x1dc   : > { %v416_v9 = vadd.f32 %v415_v10, %v414_v19 }
 0x1dd   : > { %v1318_v8 = vadd.f32 %v1317_v53, %v1316_v51  ;;  %v361_v56 = vrot.slane %v360_v20, 1 }
 0x1de   : > { %v417_v39 = vrot.slane %v416_v9, 1 }
 0x1df   : > { %v1320_v55 = vadd.f32 %v1319_v1, %v1318_v8  ;;  %v362_v27 = vadd.f32 %v361_v56, %v360_v20 }
 0x1e0   : > { %v418_v61 = vadd.f32 %v417_v39, %v416_v9 }
 0x1e1   : > { %v1322_v6 = vadd.f32 %v1321_v63, %v1320_v55  ;;  %1522 = vpush %v362_v27 }
 0x1e2   : > { %1524 = vpush %v418_v61 }
 0x1e3   : > { %1323 = vadd.xlane.f32.xlu1 %v1322_v6 }
 0x212   : > { %s1523_s4 = spop %1522 }
 0x213   : > { %v1334_v21 = vstv %s1523_s4  ;;  %s1525_s8 = spop %1524 }
 0x214   : > { %1335 = vst [vmem:[%s242_s29 + $0x1] sm:$0x1] %v1334_v21  ;;  %v1336_v30 = vstv %s1525_s8 }
 0x215   : > { %1337 = vst [vmem:[%s242_s29 + $0x2] sm:$0x1] %v1336_v30 }
 0x270   : > { %v1324_v18 = vpop.xlane.xlu1 %1323 }
 0x271   : > { %v1325_v31 = vrot.slane %v1324_v18, 4 }
 0x273   : > { %v1326_v32 = vadd.f32 %v1325_v31, %v1324_v18 }
 0x275   : > { %v1327_v46 = vrot.slane %v1326_v32, 2 }
 0x277   : > { %v1328_v58 = vadd.f32 %v1327_v46, %v1326_v32 }
 0x279   : > { %v1329_v38 = vrot.slane %v1328_v58, 1 }
 0x27b   : > { %v1330_v57 = vadd.f32 %v1329_v38, %v1328_v58 }
 0x27d   : > { %1526 = vpush %v1330_v57 }
 0x2ae   : > { %s1527_s25 = spop %1526 }
 0x2af   : > { %v1332_v36 = vstv %s1527_s25 }
 0x2b0   : > { %1333 = vst [vmem:[%s242_s29] sm:$0x1] %v1332_v36 }
 0x2b1 PF: > { %p16_p9 = scmp.ge.s32.totalorder %s1788_s22, 4   ;;  %s2321_s12 = smov %s1708_s13 }
 0x2b2   : > { %s2322_s13 = smov %s1712_s14  ;;  %s2323_s14 = smov %s1817_s10 }
 0x2b3   : > { %s2324_s15 = smov %s1788_s22  ;;  %18 = sbr.rel (!%p16_p9) target bundleno = 5 (0x5), region = 96 }
 0x2ba   :  { %1357 = vsyncpa [#allocation5], 1 }
 0x2bb   :  { %1359 = vsyncpa [#allocation5 + $0x1], 1 }
 0x2bc   :  { %1360 = vsyncpa [#allocation7], 1 }
 0x2bd   :  { %1362 = vsyncpa [#allocation7 + $0x1], 1 }

</bundles_post_ra>
